<compile_context>
chip_gen: v7x
topology: tpu7x:2x2x1
jax: 0.10.0
libtpu: 0.0.40
codegen_flags: <defaults>
</compile_context>

<pallas_src>
import jax
import jax.numpy as jnp
from jax.experimental import pallas as pl
from jax.experimental.pallas import tpu as pltpu


# ----------------------------------------------------------------------------
# Kernel 1: per-layer LSTM input projection (both directions), gridded over T.
#   grid step t:
#     gx[t, :, 0:4H]  = x[t]     @ W_ih_fwd' + b_fwd'    (gate order [i,f,o,g])
#     gx[t, :, 4H:8H] = x[T-1-t] @ W_ih_bwd' + b_bwd'    (bwd half pre-reversed in time)
#   bf16 MXU operands / bf16 output, f32 accumulation + f32 bias.
# ----------------------------------------------------------------------------
def gx_proj_kernel(xf_ref, xb_ref, wf_ref, wb_ref, bf_ref, bb_ref, gx_ref):
    G = wf_ref.shape[1]                           # 4H
    xf = xf_ref[0].astype(jnp.bfloat16)           # (B, D)
    xb = xb_ref[0].astype(jnp.bfloat16)           # (B, D), time-reversed view of x
    gf = jnp.dot(xf, wf_ref[...], preferred_element_type=jnp.float32) + bf_ref[...]
    gb = jnp.dot(xb, wb_ref[...], preferred_element_type=jnp.float32) + bb_ref[...]
    gx_ref[0, :, 0:G] = gf.astype(jnp.bfloat16)
    gx_ref[0, :, G:2 * G] = gb.astype(jnp.bfloat16)


def lstm_input_proj(x, w_f, w_b, b_f, b_b):
    """x: (T, B, D) f32 -> gx: (T, B, 8H) bf16 (bwd half time-reversed)."""
    T, B, D = x.shape
    G = w_f.shape[1]                              # 4H
    return pl.pallas_call(
        gx_proj_kernel,
        out_shape=jax.ShapeDtypeStruct((T, B, 2 * G), jnp.bfloat16),
        grid=(T,),
        in_specs=[
            pl.BlockSpec((1, B, D), lambda t: (t, 0, 0)),
            pl.BlockSpec((1, B, D), lambda t: (T - 1 - t, 0, 0)),   # pre-reversed bwd view
            pl.BlockSpec((D, G), lambda t: (0, 0)),
            pl.BlockSpec((D, G), lambda t: (0, 0)),
            pl.BlockSpec((1, G), lambda t: (0, 0)),
            pl.BlockSpec((1, G), lambda t: (0, 0)),
        ],
        out_specs=pl.BlockSpec((1, B, 2 * G), lambda t: (t, 0, 0)),
        compiler_params=pltpu.CompilerParams(dimension_semantics=("parallel",)),
    )(x, x, w_f, w_b, b_f, b_b)


# ----------------------------------------------------------------------------
# Kernel 2: fused bidirectional LSTM recurrence.
#   gx_ref : (T, B, 8H) bf16  [fwd gates(t) | bwd gates(T-1-t)], per-direction [i,f,o,g]
#   whh_ref: (2H, 8H)  bf16  block-diagonal fused recurrent weights
#   out    : (T, B, 2H) f32  [h_fwd | h_bwd]
# One grid-less call: whole sequence resident in VMEM, one fori_loop over time,
# per step: ONE dynamic load + ONE MXU matmul + slab activations.
# ----------------------------------------------------------------------------
def bilstm_rec_kernel(gx_ref, whh_ref, out_ref):
    T, B, G8 = gx_ref.shape
    H = G8 // 8
    G4 = 4 * H
    w = whh_ref[...]                                          # (2H, 8H) bf16

    def cell(gd, c):
        # Static lane-slab activations: one sigmoid over [i|f|o], one tanh over [g].
        ifo = jax.nn.sigmoid(gd[:, 0:3 * H])
        g = jnp.tanh(gd[:, 3 * H:G4])
        i, f, o = ifo[:, 0:H], ifo[:, H:2 * H], ifo[:, 2 * H:3 * H]
        c_new = f * c + i * g
        h_new = o * jnp.tanh(c_new)
        return h_new, c_new

    def step(t, carry):
        h_cat, c_f, c_b = carry                               # f32 state
        gx = gx_ref[t].astype(jnp.float32)                    # ONE dynamic load (B, 8H)
        gates = gx + jnp.dot(h_cat.astype(jnp.bfloat16), w,
                             preferred_element_type=jnp.float32)   # ONE fused MXU issue
        h_f, c_f = cell(gates[:, 0:G4], c_f)                  # forward direction, time t
        h_b, c_b = cell(gates[:, G4:G8], c_b)                 # backward direction, time T-1-t
        out_ref[t, :, 0:H] = h_f
        out_ref[T - 1 - t, :, H:2 * H] = h_b
        return (jnp.concatenate([h_f, h_b], axis=1), c_f, c_b)

    z = jnp.zeros((B, H), jnp.float32)
    carry0 = (jnp.zeros((B, 2 * H), jnp.float32), z, z)
    # Re-tuned unroll: fully unroll only tiny T; keep live vregs bounded otherwise.
    unroll = T if T <= 16 else 4
    jax.lax.fori_loop(0, T, step, carry0, unroll=unroll)


def bilstm_recurrence(gx, w_hh):
    T, B, G8 = gx.shape
    H = G8 // 8
    return pl.pallas_call(
        bilstm_rec_kernel,
        out_shape=jax.ShapeDtypeStruct((T, B, 2 * H), jnp.float32),
    )(gx, w_hh)


# ----------------------------------------------------------------------------
# Kernel 3: decoder, row-gridded, lane-padded output (weights pre-padded once).
# Kept in f32: it is <<1% of total FLOPs and keeps logits argmax-stable.
# ----------------------------------------------------------------------------
def decoder_kernel(h_ref, w_ref, b_ref, o_ref):
    o_ref[...] = (jnp.dot(h_ref[...], w_ref[...],
                          preferred_element_type=jnp.float32) + b_ref[...])


def _row_tile(n):
    for t in (512, 256, 128, 64, 32, 16, 8):
        if n % t == 0:
            return t
    return n


def decoder(h2d, w_pad, b_pad):
    N, D = h2d.shape
    Cp = w_pad.shape[1]
    tm = _row_tile(N)
    return pl.pallas_call(
        decoder_kernel,
        out_shape=jax.ShapeDtypeStruct((N, Cp), jnp.float32),
        grid=(N // tm,),
        in_specs=[
            pl.BlockSpec((tm, D), lambda i: (i, 0)),
            pl.BlockSpec((D, Cp), lambda i: (0, 0)),
            pl.BlockSpec((1, Cp), lambda i: (0, 0)),
        ],
        out_specs=pl.BlockSpec((tm, Cp), lambda i: (i, 0)),
        compiler_params=pltpu.CompilerParams(dimension_semantics=("parallel",)),
    )(h2d, w_pad, b_pad)


# ----------------------------------------------------------------------------
# Parameter init (raw, PyTorch-like layout; gate order [i, f, g, o]).
# ----------------------------------------------------------------------------
def init_params(key, vocab_size, embedding_dim, hidden_dim, num_layers, num_classes):
    keys = jax.random.split(key, 3 + 8 * num_layers)
    ki = 0
    params = {}
    params["emb"] = jax.random.normal(keys[ki], (vocab_size, embedding_dim), jnp.float32)
    ki += 1

    k = 1.0 / float(hidden_dim) ** 0.5
    lstm_layers = []
    for layer in range(num_layers):
        d_in = embedding_dim if layer == 0 else 2 * hidden_dim
        layer_p = {}
        for dname in ("fwd", "bwd"):
            w_ih = jax.random.uniform(keys[ki], (d_in, 4 * hidden_dim), jnp.float32, -k, k); ki += 1
            w_hh = jax.random.uniform(keys[ki], (hidden_dim, 4 * hidden_dim), jnp.float32, -k, k); ki += 1
            b_ih = jax.random.uniform(keys[ki], (4 * hidden_dim,), jnp.float32, -k, k); ki += 1
            b_hh = jax.random.uniform(keys[ki], (4 * hidden_dim,), jnp.float32, -k, k); ki += 1
            layer_p[dname] = (w_ih, w_hh, b_ih + b_hh)
        lstm_layers.append(layer_p)
    params["lstm"] = lstm_layers

    kd = 1.0 / float(2 * hidden_dim) ** 0.5
    params["dec_w"] = jax.random.uniform(keys[ki], (2 * hidden_dim, num_classes), jnp.float32, -kd, kd); ki += 1
    params["dec_b"] = jax.random.uniform(keys[ki], (num_classes,), jnp.float32, -kd, kd); ki += 1
    return params


# ----------------------------------------------------------------------------
# One-time parameter preprocessing (hoisted out of the per-call forward path).
# ----------------------------------------------------------------------------
def _perm_ifog(w):
    """Reorder gate blocks along the last axis from [i, f, g, o] to [i, f, o, g]."""
    H = w.shape[-1] // 4
    return jnp.concatenate([w[..., 0:2 * H], w[..., 3 * H:4 * H], w[..., 2 * H:3 * H]], axis=-1)


def preprocess_params(params):
    fused = {"emb": params["emb"], "layers": []}
    for layer_p in params["lstm"]:
        wih_f, whh_f, b_f = layer_p["fwd"]
        wih_b, whh_b, b_b = layer_p["bwd"]
        H = whh_f.shape[0]
        # Block-diagonal fused recurrent weight: [h_f | h_b] @ whh -> all 8H gates at once.
        whh = jnp.zeros((2 * H, 8 * H), jnp.float32)
        whh = whh.at[0:H, 0:4 * H].set(_perm_ifog(whh_f))
        whh = whh.at[H:2 * H, 4 * H:8 * H].set(_perm_ifog(whh_b))
        fused["layers"].append(dict(
            w_ih_f=_perm_ifog(wih_f).astype(jnp.bfloat16),
            w_ih_b=_perm_ifog(wih_b).astype(jnp.bfloat16),
            b_f=_perm_ifog(b_f).reshape(1, 4 * H),
            b_b=_perm_ifog(b_b).reshape(1, 4 * H),
            w_hh=whh.astype(jnp.bfloat16),
        ))
    D2, C = params["dec_w"].shape
    Cp = pl.cdiv(C, 128) * 128
    fused["dec_w"] = jnp.zeros((D2, Cp), jnp.float32).at[:, :C].set(params["dec_w"])
    fused["dec_b"] = jnp.zeros((1, Cp), jnp.float32).at[0, :C].set(params["dec_b"])
    return fused


# ----------------------------------------------------------------------------
# Forward pass (matches NerModel.forward; dropout = identity / eval mode).
# ----------------------------------------------------------------------------
def ner_forward(fp, x, num_classes):
    T, B = x.shape
    # Embedding lookup (gather) stays in plain JAX; dropout -> identity.
    h = jnp.take(fp["emb"], x, axis=0)                        # (T, B, E) f32
    for lp in fp["layers"]:
        gx = lstm_input_proj(h, lp["w_ih_f"], lp["w_ih_b"], lp["b_f"], lp["b_b"])
        h = bilstm_recurrence(gx, lp["w_hh"])                 # (T, B, 2H) f32
    D2 = h.shape[-1]
    logits = decoder(h.reshape(T * B, D2), fp["dec_w"], fp["dec_b"])
    return logits[:, :num_classes].reshape(T, B, num_classes)


# ----------------------------------------------------------------------------
# Pure-JAX f32 reference (correctness check only).
# ----------------------------------------------------------------------------
def _ref_lstm_dir(x_seq, w_ih, w_hh, b, reverse):
    H = w_hh.shape[0]
    B = x_seq.shape[1]
    xs = x_seq[::-1] if reverse else x_seq

    def step(carry, xt):
        h, c = carry
        gates = xt @ w_ih + h @ w_hh + b
        i = jax.nn.sigmoid(gates[:, :H])
        f = jax.nn.sigmoid(gates[:, H:2 * H])
        g = jnp.tanh(gates[:, 2 * H:3 * H])
        o = jax.nn.sigmoid(gates[:, 3 * H:4 * H])
        c = f * c + i * g
        h = o * jnp.tanh(c)
        return (h, c), h

    init = (jnp.zeros((B, H), jnp.float32), jnp.zeros((B, H), jnp.float32))
    _, out = jax.lax.scan(step, init, xs)
    return out[::-1] if reverse else out


def ref_forward(params, x):
    h = jnp.take(params["emb"], x, axis=0)
    for layer_p in params["lstm"]:
        fwd = _ref_lstm_dir(h, *layer_p["fwd"], reverse=False)
        bwd = _ref_lstm_dir(h, *layer_p["bwd"], reverse=True)
        h = jnp.concatenate([fwd, bwd], axis=-1)
    return h @ params["dec_w"] + params["dec_b"]


if __name__ == "__main__":
    VOCAB, EMB, HID, LAYERS, CLASSES = 16, 32, 32, 2, 8
    SEQ, BATCH = 8, 2

    root = jax.random.PRNGKey(0)
    k_param, k_x = jax.random.split(root)

    params = init_params(k_param, VOCAB, EMB, HID, LAYERS, CLASSES)
    fused = preprocess_params(params)          # one-time weight plumbing, outside jit
    x = jax.random.randint(k_x, (SEQ, BATCH), 0, VOCAB, dtype=jnp.int32)

    fwd_fn = jax.jit(ner_forward, static_argnums=2)
    out = jax.block_until_ready(fwd_fn(fused, x, CLASSES))
    ref = jax.block_until_ready(ref_forward(params, x))

    assert out.shape == (SEQ, BATCH, CLASSES)
    # bf16 MXU operands (f32 accumulation) vs the all-f32 reference -> loosened tolerance.
    assert jnp.allclose(out, ref, atol=2e-2, rtol=2e-2), "Pallas output mismatch vs reference"

    # predict() equivalent would be jnp.argmax(out, -1).tolist()
    print("KERNEL_OK")
</pallas_src>

<mosaic_0001>
module attributes {stable_mosaic.version = 11 : i64} {
  func.func @gx_proj_kernel(%arg0: i32, %arg1: memref<1x2x32xf32, #tpu.memory_space<vmem>>, %arg2: memref<1x2x32xf32, #tpu.memory_space<vmem>>, %arg3: memref<32x128xbf16, #tpu.memory_space<vmem>>, %arg4: memref<32x128xbf16, #tpu.memory_space<vmem>>, %arg5: memref<1x128xf32, #tpu.memory_space<vmem>>, %arg6: memref<1x128xf32, #tpu.memory_space<vmem>>, %arg7: memref<1x2x256xbf16, #tpu.memory_space<vmem>>) attributes {dimension_semantics = [#tpu.dimension_semantics<parallel>], iteration_bounds = array<i64: 8>, scalar_prefetch = 0 : i64, scratch_operands = 0 : i64, tpu.core_type = #tpu.core_type<tc>, window_params = [{transform_indices = @transform_0, window_bounds = array<i64: 1, 2, 32>}, {transform_indices = @transform_1, window_bounds = array<i64: 1, 2, 32>}, {pipeline_mode = #tpu.pipeline_mode<synchronous>, transform_indices = @transform_2, window_bounds = array<i64: 32, 128>}, {pipeline_mode = #tpu.pipeline_mode<synchronous>, transform_indices = @transform_3, window_bounds = array<i64: 32, 128>}, {pipeline_mode = #tpu.pipeline_mode<synchronous>, transform_indices = @transform_4, window_bounds = array<i64: 1, 128>}, {pipeline_mode = #tpu.pipeline_mode<synchronous>, transform_indices = @transform_5, window_bounds = array<i64: 1, 128>}, {transform_indices = @transform_6, window_bounds = array<i64: 1, 2, 256>}]} {
    %c0 = arith.constant 0 : index
    %c0_0 = arith.constant 0 : index
    %c0_1 = arith.constant 0 : index
    %0 = vector.load %arg1[%c0, %c0_0, %c0_1] : memref<1x2x32xf32, #tpu.memory_space<vmem>>, vector<1x2x32xf32>
    %1 = vector.shape_cast %0 : vector<1x2x32xf32> to vector<2x32xf32>
    %2 = arith.truncf %1 : vector<2x32xf32> to vector<2x32xbf16>
    %c0_2 = arith.constant 0 : index
    %c0_3 = arith.constant 0 : index
    %c0_4 = arith.constant 0 : index
    %3 = vector.load %arg2[%c0_2, %c0_3, %c0_4] : memref<1x2x32xf32, #tpu.memory_space<vmem>>, vector<1x2x32xf32>
    %4 = vector.shape_cast %3 : vector<1x2x32xf32> to vector<2x32xf32>
    %5 = arith.truncf %4 : vector<2x32xf32> to vector<2x32xbf16>
    %c0_5 = arith.constant 0 : index
    %c0_6 = arith.constant 0 : index
    %6 = vector.load %arg3[%c0_5, %c0_6] : memref<32x128xbf16, #tpu.memory_space<vmem>>, vector<32x128xbf16>
    %cst = arith.constant dense<0.000000e+00> : vector<2x128xf32>
    %7 = tpu.matmul %2, %6, %cst {dimension_numbers = #tpu.dot_dimension_numbers<[1], [0], [0], [1], [0, 0, 1, 1], [], []>} : vector<2x32xbf16>, vector<32x128xbf16>, vector<2x128xf32> -> vector<2x128xf32>
    %c0_7 = arith.constant 0 : index
    %c0_8 = arith.constant 0 : index
    %8 = vector.load %arg5[%c0_7, %c0_8] : memref<1x128xf32, #tpu.memory_space<vmem>>, vector<1x128xf32>
    %9 = vector.broadcast %8 : vector<1x128xf32> to vector<2x128xf32>
    %10 = arith.addf %7, %9 : vector<2x128xf32>
    %c0_9 = arith.constant 0 : index
    %c0_10 = arith.constant 0 : index
    %11 = vector.load %arg4[%c0_9, %c0_10] : memref<32x128xbf16, #tpu.memory_space<vmem>>, vector<32x128xbf16>
    %cst_11 = arith.constant dense<0.000000e+00> : vector<2x128xf32>
    %12 = tpu.matmul %5, %11, %cst_11 {dimension_numbers = #tpu.dot_dimension_numbers<[1], [0], [0], [1], [0, 0, 1, 1], [], []>} : vector<2x32xbf16>, vector<32x128xbf16>, vector<2x128xf32> -> vector<2x128xf32>
    %c0_12 = arith.constant 0 : index
    %c0_13 = arith.constant 0 : index
    %13 = vector.load %arg6[%c0_12, %c0_13] : memref<1x128xf32, #tpu.memory_space<vmem>>, vector<1x128xf32>
    %14 = vector.broadcast %13 : vector<1x128xf32> to vector<2x128xf32>
    %15 = arith.addf %12, %14 : vector<2x128xf32>
    %16 = arith.truncf %10 : vector<2x128xf32> to vector<2x128xbf16>
    %c0_14 = arith.constant 0 : index
    %c0_15 = arith.constant 0 : index
    %c0_16 = arith.constant 0 : index
    %17 = vector.load %arg7[%c0_14, %c0_15, %c0_16] : memref<1x2x256xbf16, #tpu.memory_space<vmem>>, vector<1x2x128xbf16>
    %18 = vector.shape_cast %17 : vector<1x2x128xbf16> to vector<2x128xbf16>
    %19 = vector.shape_cast %16 : vector<2x128xbf16> to vector<1x2x128xbf16>
    tpu.vector_store %arg7[%c0_14, %c0_15, %c0_16], %19 {strides = array<i32>} : memref<1x2x256xbf16, #tpu.memory_space<vmem>>, vector<1x2x128xbf16>,
    %20 = arith.truncf %15 : vector<2x128xf32> to vector<2x128xbf16>
    %c0_17 = arith.constant 0 : index
    %c0_18 = arith.constant 0 : index
    %c128 = arith.constant 128 : index
    %21 = vector.load %arg7[%c0_17, %c0_18, %c128] : memref<1x2x256xbf16, #tpu.memory_space<vmem>>, vector<1x2x128xbf16>
    %22 = vector.shape_cast %21 : vector<1x2x128xbf16> to vector<2x128xbf16>
    %23 = vector.shape_cast %20 : vector<2x128xbf16> to vector<1x2x128xbf16>
    tpu.vector_store %arg7[%c0_17, %c0_18, %c128], %23 {strides = array<i32>} : memref<1x2x256xbf16, #tpu.memory_space<vmem>>, vector<1x2x128xbf16>,
    return
  }
  func.func @transform_0(%arg0: i32) -> (i32, i32, i32) {
    %c0_i32 = arith.constant 0 : i32
    %c0_i32_0 = arith.constant 0 : i32
    %c0_i32_1 = arith.constant 0 : i32
    return %arg0, %c0_i32, %c0_i32_0 : i32, i32, i32
  }
  func.func @transform_1(%arg0: i32) -> (i32, i32, i32) {
    %c7_i32 = arith.constant 7 : i32
    %0 = arith.subi %c7_i32, %arg0 : i32
    %c0_i32 = arith.constant 0 : i32
    %c0_i32_0 = arith.constant 0 : i32
    %c0_i32_1 = arith.constant 0 : i32
    return %0, %c0_i32, %c0_i32_0 : i32, i32, i32
  }
  func.func @transform_2(%arg0: i32) -> (i32, i32) {
    %c0_i32 = arith.constant 0 : i32
    %c0_i32_0 = arith.constant 0 : i32
    %c0_i32_1 = arith.constant 0 : i32
    return %c0_i32, %c0_i32_0 : i32, i32
  }
  func.func @transform_3(%arg0: i32) -> (i32, i32) {
    %c0_i32 = arith.constant 0 : i32
    %c0_i32_0 = arith.constant 0 : i32
    %c0_i32_1 = arith.constant 0 : i32
    return %c0_i32, %c0_i32_0 : i32, i32
  }
  func.func @transform_4(%arg0: i32) -> (i32, i32) {
    %c0_i32 = arith.constant 0 : i32
    %c0_i32_0 = arith.constant 0 : i32
    %c0_i32_1 = arith.constant 0 : i32
    return %c0_i32, %c0_i32_0 : i32, i32
  }
  func.func @transform_5(%arg0: i32) -> (i32, i32) {
    %c0_i32 = arith.constant 0 : i32
    %c0_i32_0 = arith.constant 0 : i32
    %c0_i32_1 = arith.constant 0 : i32
    return %c0_i32, %c0_i32_0 : i32, i32
  }
  func.func @transform_6(%arg0: i32) -> (i32, i32, i32) {
    %c0_i32 = arith.constant 0 : i32
    %c0_i32_0 = arith.constant 0 : i32
    %c0_i32_1 = arith.constant 0 : i32
    return %arg0, %c0_i32, %c0_i32_0 : i32, i32, i32
  }
}

module attributes {stable_mosaic.version = 11 : i64} {
  func.func @bilstm_rec_kernel(%arg0: memref<8x2x256xbf16, #tpu.memory_space<vmem>>, %arg1: memref<64x256xbf16, #tpu.memory_space<vmem>>, %arg2: memref<8x2x64xf32, #tpu.memory_space<vmem>>) attributes {dimension_semantics = [], scalar_prefetch = 0 : i64, scratch_operands = 0 : i64, tpu.core_type = #tpu.core_type<tc>} {
    %c0 = arith.constant 0 : index
    %c0_0 = arith.constant 0 : index
    %0 = vector.load %arg1[%c0, %c0_0] : memref<64x256xbf16, #tpu.memory_space<vmem>>, vector<64x256xbf16>
    %cst = arith.constant 0.000000e+00 : f32
    %1 = vector.broadcast %cst : f32 to vector<2x32xf32>
    %cst_1 = arith.constant 0.000000e+00 : f32
    %2 = vector.broadcast %cst_1 : f32 to vector<2x64xf32>
    %c0_i32 = arith.constant 0 : i32
    %3 = arith.index_cast %c0_i32 : i32 to index
    %c0_2 = arith.constant 0 : index
    %c0_3 = arith.constant 0 : index
    %4 = vector.load %arg0[%3, %c0_2, %c0_3] : memref<8x2x256xbf16, #tpu.memory_space<vmem>>, vector<1x2x256xbf16>
    %5 = vector.shape_cast %4 : vector<1x2x256xbf16> to vector<2x256xbf16>
    %6 = arith.extf %5 : vector<2x256xbf16> to vector<2x256xf32>
    %7 = arith.truncf %2 : vector<2x64xf32> to vector<2x64xbf16>
    %cst_4 = arith.constant dense<0.000000e+00> : vector<2x256xf32>
    %8 = tpu.matmul %7, %0, %cst_4 {dimension_numbers = #tpu.dot_dimension_numbers<[1], [0], [0], [1], [0, 0, 1, 1], [], []>} : vector<2x64xbf16>, vector<64x256xbf16>, vector<2x256xf32> -> vector<2x256xf32>
    %9 = arith.addf %6, %8 : vector<2x256xf32>
    %10 = vector.extract_strided_slice %9 {offsets = [0, 0], sizes = [2, 128], strides = [1, 1]} : vector<2x256xf32> to vector<2x128xf32>
    %11 = vector.extract_strided_slice %10 {offsets = [0, 0], sizes = [2, 96], strides = [1, 1]} : vector<2x128xf32> to vector<2x96xf32>
    %12 = arith.negf %11 : vector<2x96xf32>
    %13 = math.exp %12 : vector<2x96xf32>
    %cst_5 = arith.constant 1.000000e+00 : f32
    %14 = vector.broadcast %cst_5 : f32 to vector<2x96xf32>
    %15 = arith.addf %14, %13 : vector<2x96xf32>
    %16 = arith.divf %14, %15 : vector<2x96xf32>
    %17 = vector.extract_strided_slice %10 {offsets = [0, 96], sizes = [2, 32], strides = [1, 1]} : vector<2x128xf32> to vector<2x32xf32>
    %18 = math.tanh %17 : vector<2x32xf32>
    %19 = vector.extract_strided_slice %16 {offsets = [0, 0], sizes = [2, 32], strides = [1, 1]} : vector<2x96xf32> to vector<2x32xf32>
    %20 = vector.extract_strided_slice %16 {offsets = [0, 32], sizes = [2, 32], strides = [1, 1]} : vector<2x96xf32> to vector<2x32xf32>
    %21 = vector.extract_strided_slice %16 {offsets = [0, 64], sizes = [2, 32], strides = [1, 1]} : vector<2x96xf32> to vector<2x32xf32>
    %22 = arith.mulf %20, %1 : vector<2x32xf32>
    %23 = arith.mulf %19, %18 : vector<2x32xf32>
    %24 = arith.addf %22, %23 : vector<2x32xf32>
    %25 = math.tanh %24 : vector<2x32xf32>
    %26 = arith.mulf %21, %25 : vector<2x32xf32>
    %27 = vector.extract_strided_slice %9 {offsets = [0, 128], sizes = [2, 128], strides = [1, 1]} : vector<2x256xf32> to vector<2x128xf32>
    %28 = vector.extract_strided_slice %27 {offsets = [0, 0], sizes = [2, 96], strides = [1, 1]} : vector<2x128xf32> to vector<2x96xf32>
    %29 = arith.negf %28 : vector<2x96xf32>
    %30 = math.exp %29 : vector<2x96xf32>
    %cst_6 = arith.constant 1.000000e+00 : f32
    %31 = vector.broadcast %cst_6 : f32 to vector<2x96xf32>
    %32 = arith.addf %31, %30 : vector<2x96xf32>
    %33 = arith.divf %31, %32 : vector<2x96xf32>
    %34 = vector.extract_strided_slice %27 {offsets = [0, 96], sizes = [2, 32], strides = [1, 1]} : vector<2x128xf32> to vector<2x32xf32>
    %35 = math.tanh %34 : vector<2x32xf32>
    %36 = vector.extract_strided_slice %33 {offsets = [0, 0], sizes = [2, 32], strides = [1, 1]} : vector<2x96xf32> to vector<2x32xf32>
    %37 = vector.extract_strided_slice %33 {offsets = [0, 32], sizes = [2, 32], strides = [1, 1]} : vector<2x96xf32> to vector<2x32xf32>
    %38 = vector.extract_strided_slice %33 {offsets = [0, 64], sizes = [2, 32], strides = [1, 1]} : vector<2x96xf32> to vector<2x32xf32>
    %39 = arith.mulf %37, %1 : vector<2x32xf32>
    %40 = arith.mulf %36, %35 : vector<2x32xf32>
    %41 = arith.addf %39, %40 : vector<2x32xf32>
    %42 = math.tanh %41 : vector<2x32xf32>
    %43 = arith.mulf %38, %42 : vector<2x32xf32>
    %44 = arith.index_cast %c0_i32 : i32 to index
    %c0_7 = arith.constant 0 : index
    %c0_8 = arith.constant 0 : index
    %45 = vector.load %arg2[%44, %c0_7, %c0_8] : memref<8x2x64xf32, #tpu.memory_space<vmem>>, vector<1x2x32xf32>
    %46 = vector.shape_cast %45 : vector<1x2x32xf32> to vector<2x32xf32>
    %47 = vector.shape_cast %26 : vector<2x32xf32> to vector<1x2x32xf32>
    tpu.vector_store %arg2[%44, %c0_7, %c0_8], %47 {strides = array<i32>} : memref<8x2x64xf32, #tpu.memory_space<vmem>>, vector<1x2x32xf32>,
    %c7_i32 = arith.constant 7 : i32
    %48 = arith.subi %c7_i32, %c0_i32 : i32
    %49 = arith.index_cast %48 : i32 to index
    %c0_9 = arith.constant 0 : index
    %c32 = arith.constant 32 : index
    %50 = vector.load %arg2[%49, %c0_9, %c32] : memref<8x2x64xf32, #tpu.memory_space<vmem>>, vector<1x2x32xf32>
    %51 = vector.shape_cast %50 : vector<1x2x32xf32> to vector<2x32xf32>
    %52 = vector.shape_cast %43 : vector<2x32xf32> to vector<1x2x32xf32>
    tpu.vector_store %arg2[%49, %c0_9, %c32], %52 {strides = array<i32>} : memref<8x2x64xf32, #tpu.memory_space<vmem>>, vector<1x2x32xf32>,
    %53 = tpu.concatenate %26, %43 in 1 : vector<2x32xf32>, vector<2x32xf32> -> vector<2x64xf32>
    %c1_i32 = arith.constant 1 : i32
    %54 = arith.index_cast %c1_i32 : i32 to index
    %c0_10 = arith.constant 0 : index
    %c0_11 = arith.constant 0 : index
    %55 = vector.load %arg0[%54, %c0_10, %c0_11] : memref<8x2x256xbf16, #tpu.memory_space<vmem>>, vector<1x2x256xbf16>
    %56 = vector.shape_cast %55 : vector<1x2x256xbf16> to vector<2x256xbf16>
    %57 = arith.extf %56 : vector<2x256xbf16> to vector<2x256xf32>
    %58 = arith.truncf %53 : vector<2x64xf32> to vector<2x64xbf16>
    %cst_12 = arith.constant dense<0.000000e+00> : vector<2x256xf32>
    %59 = tpu.matmul %58, %0, %cst_12 {dimension_numbers = #tpu.dot_dimension_numbers<[1], [0], [0], [1], [0, 0, 1, 1], [], []>} : vector<2x64xbf16>, vector<64x256xbf16>, vector<2x256xf32> -> vector<2x256xf32>
    %60 = arith.addf %57, %59 : vector<2x256xf32>
    %61 = vector.extract_strided_slice %60 {offsets = [0, 0], sizes = [2, 128], strides = [1, 1]} : vector<2x256xf32> to vector<2x128xf32>
    %62 = vector.extract_strided_slice %61 {offsets = [0, 0], sizes = [2, 96], strides = [1, 1]} : vector<2x128xf32> to vector<2x96xf32>
    %63 = arith.negf %62 : vector<2x96xf32>
    %64 = math.exp %63 : vector<2x96xf32>
    %cst_13 = arith.constant 1.000000e+00 : f32
    %65 = vector.broadcast %cst_13 : f32 to vector<2x96xf32>
    %66 = arith.addf %65, %64 : vector<2x96xf32>
    %67 = arith.divf %65, %66 : vector<2x96xf32>
    %68 = vector.extract_strided_slice %61 {offsets = [0, 96], sizes = [2, 32], strides = [1, 1]} : vector<2x128xf32> to vector<2x32xf32>
    %69 = math.tanh %68 : vector<2x32xf32>
    %70 = vector.extract_strided_slice %67 {offsets = [0, 0], sizes = [2, 32], strides = [1, 1]} : vector<2x96xf32> to vector<2x32xf32>
    %71 = vector.extract_strided_slice %67 {offsets = [0, 32], sizes = [2, 32], strides = [1, 1]} : vector<2x96xf32> to vector<2x32xf32>
    %72 = vector.extract_strided_slice %67 {offsets = [0, 64], sizes = [2, 32], strides = [1, 1]} : vector<2x96xf32> to vector<2x32xf32>
    %73 = arith.mulf %71, %24 : vector<2x32xf32>
    %74 = arith.mulf %70, %69 : vector<2x32xf32>
    %75 = arith.addf %73, %74 : vector<2x32xf32>
    %76 = math.tanh %75 : vector<2x32xf32>
    %77 = arith.mulf %72, %76 : vector<2x32xf32>
    %78 = vector.extract_strided_slice %60 {offsets = [0, 128], sizes = [2, 128], strides = [1, 1]} : vector<2x256xf32> to vector<2x128xf32>
    %79 = vector.extract_strided_slice %78 {offsets = [0, 0], sizes = [2, 96], strides = [1, 1]} : vector<2x128xf32> to vector<2x96xf32>
    %80 = arith.negf %79 : vector<2x96xf32>
    %81 = math.exp %80 : vector<2x96xf32>
    %cst_14 = arith.constant 1.000000e+00 : f32
    %82 = vector.broadcast %cst_14 : f32 to vector<2x96xf32>
    %83 = arith.addf %82, %81 : vector<2x96xf32>
    %84 = arith.divf %82, %83 : vector<2x96xf32>
    %85 = vector.extract_strided_slice %78 {offsets = [0, 96], sizes = [2, 32], strides = [1, 1]} : vector<2x128xf32> to vector<2x32xf32>
    %86 = math.tanh %85 : vector<2x32xf32>
    %87 = vector.extract_strided_slice %84 {offsets = [0, 0], sizes = [2, 32], strides = [1, 1]} : vector<2x96xf32> to vector<2x32xf32>
    %88 = vector.extract_strided_slice %84 {offsets = [0, 32], sizes = [2, 32], strides = [1, 1]} : vector<2x96xf32> to vector<2x32xf32>
    %89 = vector.extract_strided_slice %84 {offsets = [0, 64], sizes = [2, 32], strides = [1, 1]} : vector<2x96xf32> to vector<2x32xf32>
    %90 = arith.mulf %88, %41 : vector<2x32xf32>
    %91 = arith.mulf %87, %86 : vector<2x32xf32>
    %92 = arith.addf %90, %91 : vector<2x32xf32>
    %93 = math.tanh %92 : vector<2x32xf32>
    %94 = arith.mulf %89, %93 : vector<2x32xf32>
    %95 = arith.index_cast %c1_i32 : i32 to index
    %c0_15 = arith.constant 0 : index
    %c0_16 = arith.constant 0 : index
    %96 = vector.load %arg2[%95, %c0_15, %c0_16] : memref<8x2x64xf32, #tpu.memory_space<vmem>>, vector<1x2x32xf32>
    %97 = vector.shape_cast %96 : vector<1x2x32xf32> to vector<2x32xf32>
    %98 = vector.shape_cast %77 : vector<2x32xf32> to vector<1x2x32xf32>
    tpu.vector_store %arg2[%95, %c0_15, %c0_16], %98 {strides = array<i32>} : memref<8x2x64xf32, #tpu.memory_space<vmem>>, vector<1x2x32xf32>,
    %c7_i32_17 = arith.constant 7 : i32
    %99 = arith.subi %c7_i32_17, %c1_i32 : i32
    %100 = arith.index_cast %99 : i32 to index
    %c0_18 = arith.constant 0 : index
    %c32_19 = arith.constant 32 : index
    %101 = vector.load %arg2[%100, %c0_18, %c32_19] : memref<8x2x64xf32, #tpu.memory_space<vmem>>, vector<1x2x32xf32>
    %102 = vector.shape_cast %101 : vector<1x2x32xf32> to vector<2x32xf32>
    %103 = vector.shape_cast %94 : vector<2x32xf32> to vector<1x2x32xf32>
    tpu.vector_store %arg2[%100, %c0_18, %c32_19], %103 {strides = array<i32>} : memref<8x2x64xf32, #tpu.memory_space<vmem>>, vector<1x2x32xf32>,
    %104 = tpu.concatenate %77, %94 in 1 : vector<2x32xf32>, vector<2x32xf32> -> vector<2x64xf32>
    %c2_i32 = arith.constant 2 : i32
    %105 = arith.index_cast %c2_i32 : i32 to index
    %c0_20 = arith.constant 0 : index
    %c0_21 = arith.constant 0 : index
    %106 = vector.load %arg0[%105, %c0_20, %c0_21] : memref<8x2x256xbf16, #tpu.memory_space<vmem>>, vector<1x2x256xbf16>
    %107 = vector.shape_cast %106 : vector<1x2x256xbf16> to vector<2x256xbf16>
    %108 = arith.extf %107 : vector<2x256xbf16> to vector<2x256xf32>
    %109 = arith.truncf %104 : vector<2x64xf32> to vector<2x64xbf16>
    %cst_22 = arith.constant dense<0.000000e+00> : vector<2x256xf32>
    %110 = tpu.matmul %109, %0, %cst_22 {dimension_numbers = #tpu.dot_dimension_numbers<[1], [0], [0], [1], [0, 0, 1, 1], [], []>} : vector<2x64xbf16>, vector<64x256xbf16>, vector<2x256xf32> -> vector<2x256xf32>
    %111 = arith.addf %108, %110 : vector<2x256xf32>
    %112 = vector.extract_strided_slice %111 {offsets = [0, 0], sizes = [2, 128], strides = [1, 1]} : vector<2x256xf32> to vector<2x128xf32>
    %113 = vector.extract_strided_slice %112 {offsets = [0, 0], sizes = [2, 96], strides = [1, 1]} : vector<2x128xf32> to vector<2x96xf32>
    %114 = arith.negf %113 : vector<2x96xf32>
    %115 = math.exp %114 : vector<2x96xf32>
    %cst_23 = arith.constant 1.000000e+00 : f32
    %116 = vector.broadcast %cst_23 : f32 to vector<2x96xf32>
    %117 = arith.addf %116, %115 : vector<2x96xf32>
    %118 = arith.divf %116, %117 : vector<2x96xf32>
    %119 = vector.extract_strided_slice %112 {offsets = [0, 96], sizes = [2, 32], strides = [1, 1]} : vector<2x128xf32> to vector<2x32xf32>
    %120 = math.tanh %119 : vector<2x32xf32>
    %121 = vector.extract_strided_slice %118 {offsets = [0, 0], sizes = [2, 32], strides = [1, 1]} : vector<2x96xf32> to vector<2x32xf32>
    %122 = vector.extract_strided_slice %118 {offsets = [0, 32], sizes = [2, 32], strides = [1, 1]} : vector<2x96xf32> to vector<2x32xf32>
    %123 = vector.extract_strided_slice %118 {offsets = [0, 64], sizes = [2, 32], strides = [1, 1]} : vector<2x96xf32> to vector<2x32xf32>
    %124 = arith.mulf %122, %75 : vector<2x32xf32>
    %125 = arith.mulf %121, %120 : vector<2x32xf32>
    %126 = arith.addf %124, %125 : vector<2x32xf32>
    %127 = math.tanh %126 : vector<2x32xf32>
    %128 = arith.mulf %123, %127 : vector<2x32xf32>
    %129 = vector.extract_strided_slice %111 {offsets = [0, 128], sizes = [2, 128], strides = [1, 1]} : vector<2x256xf32> to vector<2x128xf32>
    %130 = vector.extract_strided_slice %129 {offsets = [0, 0], sizes = [2, 96], strides = [1, 1]} : vector<2x128xf32> to vector<2x96xf32>
    %131 = arith.negf %130 : vector<2x96xf32>
    %132 = math.exp %131 : vector<2x96xf32>
    %cst_24 = arith.constant 1.000000e+00 : f32
    %133 = vector.broadcast %cst_24 : f32 to vector<2x96xf32>
    %134 = arith.addf %133, %132 : vector<2x96xf32>
    %135 = arith.divf %133, %134 : vector<2x96xf32>
    %136 = vector.extract_strided_slice %129 {offsets = [0, 96], sizes = [2, 32], strides = [1, 1]} : vector<2x128xf32> to vector<2x32xf32>
    %137 = math.tanh %136 : vector<2x32xf32>
    %138 = vector.extract_strided_slice %135 {offsets = [0, 0], sizes = [2, 32], strides = [1, 1]} : vector<2x96xf32> to vector<2x32xf32>
    %139 = vector.extract_strided_slice %135 {offsets = [0, 32], sizes = [2, 32], strides = [1, 1]} : vector<2x96xf32> to vector<2x32xf32>
    %140 = vector.extract_strided_slice %135 {offsets = [0, 64], sizes = [2, 32], strides = [1, 1]} : vector<2x96xf32> to vector<2x32xf32>
    %141 = arith.mulf %139, %92 : vector<2x32xf32>
    %142 = arith.mulf %138, %137 : vector<2x32xf32>
    %143 = arith.addf %141, %142 : vector<2x32xf32>
    %144 = math.tanh %143 : vector<2x32xf32>
    %145 = arith.mulf %140, %144 : vector<2x32xf32>
    %146 = arith.index_cast %c2_i32 : i32 to index
    %c0_25 = arith.constant 0 : index
    %c0_26 = arith.constant 0 : index
    %147 = vector.load %arg2[%146, %c0_25, %c0_26] : memref<8x2x64xf32, #tpu.memory_space<vmem>>, vector<1x2x32xf32>
    %148 = vector.shape_cast %147 : vector<1x2x32xf32> to vector<2x32xf32>
    %149 = vector.shape_cast %128 : vector<2x32xf32> to vector<1x2x32xf32>
    tpu.vector_store %arg2[%146, %c0_25, %c0_26], %149 {strides = array<i32>} : memref<8x2x64xf32, #tpu.memory_space<vmem>>, vector<1x2x32xf32>,
    %c7_i32_27 = arith.constant 7 : i32
    %150 = arith.subi %c7_i32_27, %c2_i32 : i32
    %151 = arith.index_cast %150 : i32 to index
    %c0_28 = arith.constant 0 : index
    %c32_29 = arith.constant 32 : index
    %152 = vector.load %arg2[%151, %c0_28, %c32_29] : memref<8x2x64xf32, #tpu.memory_space<vmem>>, vector<1x2x32xf32>
    %153 = vector.shape_cast %152 : vector<1x2x32xf32> to vector<2x32xf32>
    %154 = vector.shape_cast %145 : vector<2x32xf32> to vector<1x2x32xf32>
    tpu.vector_store %arg2[%151, %c0_28, %c32_29], %154 {strides = array<i32>} : memref<8x2x64xf32, #tpu.memory_space<vmem>>, vector<1x2x32xf32>,
    %155 = tpu.concatenate %128, %145 in 1 : vector<2x32xf32>, vector<2x32xf32> -> vector<2x64xf32>
    %c3_i32 = arith.constant 3 : i32
    %156 = arith.index_cast %c3_i32 : i32 to index
    %c0_30 = arith.constant 0 : index
    %c0_31 = arith.constant 0 : index
    %157 = vector.load %arg0[%156, %c0_30, %c0_31] : memref<8x2x256xbf16, #tpu.memory_space<vmem>>, vector<1x2x256xbf16>
    %158 = vector.shape_cast %157 : vector<1x2x256xbf16> to vector<2x256xbf16>
    %159 = arith.extf %158 : vector<2x256xbf16> to vector<2x256xf32>
    %160 = arith.truncf %155 : vector<2x64xf32> to vector<2x64xbf16>
    %cst_32 = arith.constant dense<0.000000e+00> : vector<2x256xf32>
    %161 = tpu.matmul %160, %0, %cst_32 {dimension_numbers = #tpu.dot_dimension_numbers<[1], [0], [0], [1], [0, 0, 1, 1], [], []>} : vector<2x64xbf16>, vector<64x256xbf16>, vector<2x256xf32> -> vector<2x256xf32>
    %162 = arith.addf %159, %161 : vector<2x256xf32>
    %163 = vector.extract_strided_slice %162 {offsets = [0, 0], sizes = [2, 128], strides = [1, 1]} : vector<2x256xf32> to vector<2x128xf32>
    %164 = vector.extract_strided_slice %163 {offsets = [0, 0], sizes = [2, 96], strides = [1, 1]} : vector<2x128xf32> to vector<2x96xf32>
    %165 = arith.negf %164 : vector<2x96xf32>
    %166 = math.exp %165 : vector<2x96xf32>
    %cst_33 = arith.constant 1.000000e+00 : f32
    %167 = vector.broadcast %cst_33 : f32 to vector<2x96xf32>
    %168 = arith.addf %167, %166 : vector<2x96xf32>
    %169 = arith.divf %167, %168 : vector<2x96xf32>
    %170 = vector.extract_strided_slice %163 {offsets = [0, 96], sizes = [2, 32], strides = [1, 1]} : vector<2x128xf32> to vector<2x32xf32>
    %171 = math.tanh %170 : vector<2x32xf32>
    %172 = vector.extract_strided_slice %169 {offsets = [0, 0], sizes = [2, 32], strides = [1, 1]} : vector<2x96xf32> to vector<2x32xf32>
    %173 = vector.extract_strided_slice %169 {offsets = [0, 32], sizes = [2, 32], strides = [1, 1]} : vector<2x96xf32> to vector<2x32xf32>
    %174 = vector.extract_strided_slice %169 {offsets = [0, 64], sizes = [2, 32], strides = [1, 1]} : vector<2x96xf32> to vector<2x32xf32>
    %175 = arith.mulf %173, %126 : vector<2x32xf32>
    %176 = arith.mulf %172, %171 : vector<2x32xf32>
    %177 = arith.addf %175, %176 : vector<2x32xf32>
    %178 = math.tanh %177 : vector<2x32xf32>
    %179 = arith.mulf %174, %178 : vector<2x32xf32>
    %180 = vector.extract_strided_slice %162 {offsets = [0, 128], sizes = [2, 128], strides = [1, 1]} : vector<2x256xf32> to vector<2x128xf32>
    %181 = vector.extract_strided_slice %180 {offsets = [0, 0], sizes = [2, 96], strides = [1, 1]} : vector<2x128xf32> to vector<2x96xf32>
    %182 = arith.negf %181 : vector<2x96xf32>
    %183 = math.exp %182 : vector<2x96xf32>
    %cst_34 = arith.constant 1.000000e+00 : f32
    %184 = vector.broadcast %cst_34 : f32 to vector<2x96xf32>
    %185 = arith.addf %184, %183 : vector<2x96xf32>
    %186 = arith.divf %184, %185 : vector<2x96xf32>
    %187 = vector.extract_strided_slice %180 {offsets = [0, 96], sizes = [2, 32], strides = [1, 1]} : vector<2x128xf32> to vector<2x32xf32>
    %188 = math.tanh %187 : vector<2x32xf32>
    %189 = vector.extract_strided_slice %186 {offsets = [0, 0], sizes = [2, 32], strides = [1, 1]} : vector<2x96xf32> to vector<2x32xf32>
    %190 = vector.extract_strided_slice %186 {offsets = [0, 32], sizes = [2, 32], strides = [1, 1]} : vector<2x96xf32> to vector<2x32xf32>
    %191 = vector.extract_strided_slice %186 {offsets = [0, 64], sizes = [2, 32], strides = [1, 1]} : vector<2x96xf32> to vector<2x32xf32>
    %192 = arith.mulf %190, %143 : vector<2x32xf32>
    %193 = arith.mulf %189, %188 : vector<2x32xf32>
    %194 = arith.addf %192, %193 : vector<2x32xf32>
    %195 = math.tanh %194 : vector<2x32xf32>
    %196 = arith.mulf %191, %195 : vector<2x32xf32>
    %197 = arith.index_cast %c3_i32 : i32 to index
    %c0_35 = arith.constant 0 : index
    %c0_36 = arith.constant 0 : index
    %198 = vector.load %arg2[%197, %c0_35, %c0_36] : memref<8x2x64xf32, #tpu.memory_space<vmem>>, vector<1x2x32xf32>
    %199 = vector.shape_cast %198 : vector<1x2x32xf32> to vector<2x32xf32>
    %200 = vector.shape_cast %179 : vector<2x32xf32> to vector<1x2x32xf32>
    tpu.vector_store %arg2[%197, %c0_35, %c0_36], %200 {strides = array<i32>} : memref<8x2x64xf32, #tpu.memory_space<vmem>>, vector<1x2x32xf32>,
    %c7_i32_37 = arith.constant 7 : i32
    %201 = arith.subi %c7_i32_37, %c3_i32 : i32
    %202 = arith.index_cast %201 : i32 to index
    %c0_38 = arith.constant 0 : index
    %c32_39 = arith.constant 32 : index
    %203 = vector.load %arg2[%202, %c0_38, %c32_39] : memref<8x2x64xf32, #tpu.memory_space<vmem>>, vector<1x2x32xf32>
    %204 = vector.shape_cast %203 : vector<1x2x32xf32> to vector<2x32xf32>
    %205 = vector.shape_cast %196 : vector<2x32xf32> to vector<1x2x32xf32>
    tpu.vector_store %arg2[%202, %c0_38, %c32_39], %205 {strides = array<i32>} : memref<8x2x64xf32, #tpu.memory_space<vmem>>, vector<1x2x32xf32>,
    %206 = tpu.concatenate %179, %196 in 1 : vector<2x32xf32>, vector<2x32xf32> -> vector<2x64xf32>
    %c4_i32 = arith.constant 4 : i32
    %207 = arith.index_cast %c4_i32 : i32 to index
    %c0_40 = arith.constant 0 : index
    %c0_41 = arith.constant 0 : index
    %208 = vector.load %arg0[%207, %c0_40, %c0_41] : memref<8x2x256xbf16, #tpu.memory_space<vmem>>, vector<1x2x256xbf16>
    %209 = vector.shape_cast %208 : vector<1x2x256xbf16> to vector<2x256xbf16>
    %210 = arith.extf %209 : vector<2x256xbf16> to vector<2x256xf32>
    %211 = arith.truncf %206 : vector<2x64xf32> to vector<2x64xbf16>
    %cst_42 = arith.constant dense<0.000000e+00> : vector<2x256xf32>
    %212 = tpu.matmul %211, %0, %cst_42 {dimension_numbers = #tpu.dot_dimension_numbers<[1], [0], [0], [1], [0, 0, 1, 1], [], []>} : vector<2x64xbf16>, vector<64x256xbf16>, vector<2x256xf32> -> vector<2x256xf32>
    %213 = arith.addf %210, %212 : vector<2x256xf32>
    %214 = vector.extract_strided_slice %213 {offsets = [0, 0], sizes = [2, 128], strides = [1, 1]} : vector<2x256xf32> to vector<2x128xf32>
    %215 = vector.extract_strided_slice %214 {offsets = [0, 0], sizes = [2, 96], strides = [1, 1]} : vector<2x128xf32> to vector<2x96xf32>
    %216 = arith.negf %215 : vector<2x96xf32>
    %217 = math.exp %216 : vector<2x96xf32>
    %cst_43 = arith.constant 1.000000e+00 : f32
    %218 = vector.broadcast %cst_43 : f32 to vector<2x96xf32>
    %219 = arith.addf %218, %217 : vector<2x96xf32>
    %220 = arith.divf %218, %219 : vector<2x96xf32>
    %221 = vector.extract_strided_slice %214 {offsets = [0, 96], sizes = [2, 32], strides = [1, 1]} : vector<2x128xf32> to vector<2x32xf32>
    %222 = math.tanh %221 : vector<2x32xf32>
    %223 = vector.extract_strided_slice %220 {offsets = [0, 0], sizes = [2, 32], strides = [1, 1]} : vector<2x96xf32> to vector<2x32xf32>
    %224 = vector.extract_strided_slice %220 {offsets = [0, 32], sizes = [2, 32], strides = [1, 1]} : vector<2x96xf32> to vector<2x32xf32>
    %225 = vector.extract_strided_slice %220 {offsets = [0, 64], sizes = [2, 32], strides = [1, 1]} : vector<2x96xf32> to vector<2x32xf32>
    %226 = arith.mulf %224, %177 : vector<2x32xf32>
    %227 = arith.mulf %223, %222 : vector<2x32xf32>
    %228 = arith.addf %226, %227 : vector<2x32xf32>
    %229 = math.tanh %228 : vector<2x32xf32>
    %230 = arith.mulf %225, %229 : vector<2x32xf32>
    %231 = vector.extract_strided_slice %213 {offsets = [0, 128], sizes = [2, 128], strides = [1, 1]} : vector<2x256xf32> to vector<2x128xf32>
    %232 = vector.extract_strided_slice %231 {offsets = [0, 0], sizes = [2, 96], strides = [1, 1]} : vector<2x128xf32> to vector<2x96xf32>
    %233 = arith.negf %232 : vector<2x96xf32>
    %234 = math.exp %233 : vector<2x96xf32>
    %cst_44 = arith.constant 1.000000e+00 : f32
    %235 = vector.broadcast %cst_44 : f32 to vector<2x96xf32>
    %236 = arith.addf %235, %234 : vector<2x96xf32>
    %237 = arith.divf %235, %236 : vector<2x96xf32>
    %238 = vector.extract_strided_slice %231 {offsets = [0, 96], sizes = [2, 32], strides = [1, 1]} : vector<2x128xf32> to vector<2x32xf32>
    %239 = math.tanh %238 : vector<2x32xf32>
    %240 = vector.extract_strided_slice %237 {offsets = [0, 0], sizes = [2, 32], strides = [1, 1]} : vector<2x96xf32> to vector<2x32xf32>
    %241 = vector.extract_strided_slice %237 {offsets = [0, 32], sizes = [2, 32], strides = [1, 1]} : vector<2x96xf32> to vector<2x32xf32>
    %242 = vector.extract_strided_slice %237 {offsets = [0, 64], sizes = [2, 32], strides = [1, 1]} : vector<2x96xf32> to vector<2x32xf32>
    %243 = arith.mulf %241, %194 : vector<2x32xf32>
    %244 = arith.mulf %240, %239 : vector<2x32xf32>
    %245 = arith.addf %243, %244 : vector<2x32xf32>
    %246 = math.tanh %245 : vector<2x32xf32>
    %247 = arith.mulf %242, %246 : vector<2x32xf32>
    %248 = arith.index_cast %c4_i32 : i32 to index
    %c0_45 = arith.constant 0 : index
    %c0_46 = arith.constant 0 : index
    %249 = vector.load %arg2[%248, %c0_45, %c0_46] : memref<8x2x64xf32, #tpu.memory_space<vmem>>, vector<1x2x32xf32>
    %250 = vector.shape_cast %249 : vector<1x2x32xf32> to vector<2x32xf32>
    %251 = vector.shape_cast %230 : vector<2x32xf32> to vector<1x2x32xf32>
    tpu.vector_store %arg2[%248, %c0_45, %c0_46], %251 {strides = array<i32>} : memref<8x2x64xf32, #tpu.memory_space<vmem>>, vector<1x2x32xf32>,
    %c7_i32_47 = arith.constant 7 : i32
    %252 = arith.subi %c7_i32_47, %c4_i32 : i32
    %253 = arith.index_cast %252 : i32 to index
    %c0_48 = arith.constant 0 : index
    %c32_49 = arith.constant 32 : index
    %254 = vector.load %arg2[%253, %c0_48, %c32_49] : memref<8x2x64xf32, #tpu.memory_space<vmem>>, vector<1x2x32xf32>
    %255 = vector.shape_cast %254 : vector<1x2x32xf32> to vector<2x32xf32>
    %256 = vector.shape_cast %247 : vector<2x32xf32> to vector<1x2x32xf32>
    tpu.vector_store %arg2[%253, %c0_48, %c32_49], %256 {strides = array<i32>} : memref<8x2x64xf32, #tpu.memory_space<vmem>>, vector<1x2x32xf32>,
    %257 = tpu.concatenate %230, %247 in 1 : vector<2x32xf32>, vector<2x32xf32> -> vector<2x64xf32>
    %c5_i32 = arith.constant 5 : i32
    %258 = arith.index_cast %c5_i32 : i32 to index
    %c0_50 = arith.constant 0 : index
    %c0_51 = arith.constant 0 : index
    %259 = vector.load %arg0[%258, %c0_50, %c0_51] : memref<8x2x256xbf16, #tpu.memory_space<vmem>>, vector<1x2x256xbf16>
    %260 = vector.shape_cast %259 : vector<1x2x256xbf16> to vector<2x256xbf16>
    %261 = arith.extf %260 : vector<2x256xbf16> to vector<2x256xf32>
    %262 = arith.truncf %257 : vector<2x64xf32> to vector<2x64xbf16>
    %cst_52 = arith.constant dense<0.000000e+00> : vector<2x256xf32>
    %263 = tpu.matmul %262, %0, %cst_52 {dimension_numbers = #tpu.dot_dimension_numbers<[1], [0], [0], [1], [0, 0, 1, 1], [], []>} : vector<2x64xbf16>, vector<64x256xbf16>, vector<2x256xf32> -> vector<2x256xf32>
    %264 = arith.addf %261, %263 : vector<2x256xf32>
    %265 = vector.extract_strided_slice %264 {offsets = [0, 0], sizes = [2, 128], strides = [1, 1]} : vector<2x256xf32> to vector<2x128xf32>
    %266 = vector.extract_strided_slice %265 {offsets = [0, 0], sizes = [2, 96], strides = [1, 1]} : vector<2x128xf32> to vector<2x96xf32>
    %267 = arith.negf %266 : vector<2x96xf32>
    %268 = math.exp %267 : vector<2x96xf32>
    %cst_53 = arith.constant 1.000000e+00 : f32
    %269 = vector.broadcast %cst_53 : f32 to vector<2x96xf32>
    %270 = arith.addf %269, %268 : vector<2x96xf32>
    %271 = arith.divf %269, %270 : vector<2x96xf32>
    %272 = vector.extract_strided_slice %265 {offsets = [0, 96], sizes = [2, 32], strides = [1, 1]} : vector<2x128xf32> to vector<2x32xf32>
    %273 = math.tanh %272 : vector<2x32xf32>
    %274 = vector.extract_strided_slice %271 {offsets = [0, 0], sizes = [2, 32], strides = [1, 1]} : vector<2x96xf32> to vector<2x32xf32>
    %275 = vector.extract_strided_slice %271 {offsets = [0, 32], sizes = [2, 32], strides = [1, 1]} : vector<2x96xf32> to vector<2x32xf32>
    %276 = vector.extract_strided_slice %271 {offsets = [0, 64], sizes = [2, 32], strides = [1, 1]} : vector<2x96xf32> to vector<2x32xf32>
    %277 = arith.mulf %275, %228 : vector<2x32xf32>
    %278 = arith.mulf %274, %273 : vector<2x32xf32>
    %279 = arith.addf %277, %278 : vector<2x32xf32>
    %280 = math.tanh %279 : vector<2x32xf32>
    %281 = arith.mulf %276, %280 : vector<2x32xf32>
    %282 = vector.extract_strided_slice %264 {offsets = [0, 128], sizes = [2, 128], strides = [1, 1]} : vector<2x256xf32> to vector<2x128xf32>
    %283 = vector.extract_strided_slice %282 {offsets = [0, 0], sizes = [2, 96], strides = [1, 1]} : vector<2x128xf32> to vector<2x96xf32>
    %284 = arith.negf %283 : vector<2x96xf32>
    %285 = math.exp %284 : vector<2x96xf32>
    %cst_54 = arith.constant 1.000000e+00 : f32
    %286 = vector.broadcast %cst_54 : f32 to vector<2x96xf32>
    %287 = arith.addf %286, %285 : vector<2x96xf32>
    %288 = arith.divf %286, %287 : vector<2x96xf32>
    %289 = vector.extract_strided_slice %282 {offsets = [0, 96], sizes = [2, 32], strides = [1, 1]} : vector<2x128xf32> to vector<2x32xf32>
    %290 = math.tanh %289 : vector<2x32xf32>
    %291 = vector.extract_strided_slice %288 {offsets = [0, 0], sizes = [2, 32], strides = [1, 1]} : vector<2x96xf32> to vector<2x32xf32>
    %292 = vector.extract_strided_slice %288 {offsets = [0, 32], sizes = [2, 32], strides = [1, 1]} : vector<2x96xf32> to vector<2x32xf32>
    %293 = vector.extract_strided_slice %288 {offsets = [0, 64], sizes = [2, 32], strides = [1, 1]} : vector<2x96xf32> to vector<2x32xf32>
    %294 = arith.mulf %292, %245 : vector<2x32xf32>
    %295 = arith.mulf %291, %290 : vector<2x32xf32>
    %296 = arith.addf %294, %295 : vector<2x32xf32>
    %297 = math.tanh %296 : vector<2x32xf32>
    %298 = arith.mulf %293, %297 : vector<2x32xf32>
    %299 = arith.index_cast %c5_i32 : i32 to index
    %c0_55 = arith.constant 0 : index
    %c0_56 = arith.constant 0 : index
    %300 = vector.load %arg2[%299, %c0_55, %c0_56] : memref<8x2x64xf32, #tpu.memory_space<vmem>>, vector<1x2x32xf32>
    %301 = vector.shape_cast %300 : vector<1x2x32xf32> to vector<2x32xf32>
    %302 = vector.shape_cast %281 : vector<2x32xf32> to vector<1x2x32xf32>
    tpu.vector_store %arg2[%299, %c0_55, %c0_56], %302 {strides = array<i32>} : memref<8x2x64xf32, #tpu.memory_space<vmem>>, vector<1x2x32xf32>,
    %c7_i32_57 = arith.constant 7 : i32
    %303 = arith.subi %c7_i32_57, %c5_i32 : i32
    %304 = arith.index_cast %303 : i32 to index
    %c0_58 = arith.constant 0 : index
    %c32_59 = arith.constant 32 : index
    %305 = vector.load %arg2[%304, %c0_58, %c32_59] : memref<8x2x64xf32, #tpu.memory_space<vmem>>, vector<1x2x32xf32>
    %306 = vector.shape_cast %305 : vector<1x2x32xf32> to vector<2x32xf32>
    %307 = vector.shape_cast %298 : vector<2x32xf32> to vector<1x2x32xf32>
    tpu.vector_store %arg2[%304, %c0_58, %c32_59], %307 {strides = array<i32>} : memref<8x2x64xf32, #tpu.memory_space<vmem>>, vector<1x2x32xf32>,
    %308 = tpu.concatenate %281, %298 in 1 : vector<2x32xf32>, vector<2x32xf32> -> vector<2x64xf32>
    %c6_i32 = arith.constant 6 : i32
    %309 = arith.index_cast %c6_i32 : i32 to index
    %c0_60 = arith.constant 0 : index
    %c0_61 = arith.constant 0 : index
    %310 = vector.load %arg0[%309, %c0_60, %c0_61] : memref<8x2x256xbf16, #tpu.memory_space<vmem>>, vector<1x2x256xbf16>
    %311 = vector.shape_cast %310 : vector<1x2x256xbf16> to vector<2x256xbf16>
    %312 = arith.extf %311 : vector<2x256xbf16> to vector<2x256xf32>
    %313 = arith.truncf %308 : vector<2x64xf32> to vector<2x64xbf16>
    %cst_62 = arith.constant dense<0.000000e+00> : vector<2x256xf32>
    %314 = tpu.matmul %313, %0, %cst_62 {dimension_numbers = #tpu.dot_dimension_numbers<[1], [0], [0], [1], [0, 0, 1, 1], [], []>} : vector<2x64xbf16>, vector<64x256xbf16>, vector<2x256xf32> -> vector<2x256xf32>
    %315 = arith.addf %312, %314 : vector<2x256xf32>
    %316 = vector.extract_strided_slice %315 {offsets = [0, 0], sizes = [2, 128], strides = [1, 1]} : vector<2x256xf32> to vector<2x128xf32>
    %317 = vector.extract_strided_slice %316 {offsets = [0, 0], sizes = [2, 96], strides = [1, 1]} : vector<2x128xf32> to vector<2x96xf32>
    %318 = arith.negf %317 : vector<2x96xf32>
    %319 = math.exp %318 : vector<2x96xf32>
    %cst_63 = arith.constant 1.000000e+00 : f32
    %320 = vector.broadcast %cst_63 : f32 to vector<2x96xf32>
    %321 = arith.addf %320, %319 : vector<2x96xf32>
    %322 = arith.divf %320, %321 : vector<2x96xf32>
    %323 = vector.extract_strided_slice %316 {offsets = [0, 96], sizes = [2, 32], strides = [1, 1]} : vector<2x128xf32> to vector<2x32xf32>
    %324 = math.tanh %323 : vector<2x32xf32>
    %325 = vector.extract_strided_slice %322 {offsets = [0, 0], sizes = [2, 32], strides = [1, 1]} : vector<2x96xf32> to vector<2x32xf32>
    %326 = vector.extract_strided_slice %322 {offsets = [0, 32], sizes = [2, 32], strides = [1, 1]} : vector<2x96xf32> to vector<2x32xf32>
    %327 = vector.extract_strided_slice %322 {offsets = [0, 64], sizes = [2, 32], strides = [1, 1]} : vector<2x96xf32> to vector<2x32xf32>
    %328 = arith.mulf %326, %279 : vector<2x32xf32>
    %329 = arith.mulf %325, %324 : vector<2x32xf32>
    %330 = arith.addf %328, %329 : vector<2x32xf32>
    %331 = math.tanh %330 : vector<2x32xf32>
    %332 = arith.mulf %327, %331 : vector<2x32xf32>
    %333 = vector.extract_strided_slice %315 {offsets = [0, 128], sizes = [2, 128], strides = [1, 1]} : vector<2x256xf32> to vector<2x128xf32>
    %334 = vector.extract_strided_slice %333 {offsets = [0, 0], sizes = [2, 96], strides = [1, 1]} : vector<2x128xf32> to vector<2x96xf32>
    %335 = arith.negf %334 : vector<2x96xf32>
    %336 = math.exp %335 : vector<2x96xf32>
    %cst_64 = arith.constant 1.000000e+00 : f32
    %337 = vector.broadcast %cst_64 : f32 to vector<2x96xf32>
    %338 = arith.addf %337, %336 : vector<2x96xf32>
    %339 = arith.divf %337, %338 : vector<2x96xf32>
    %340 = vector.extract_strided_slice %333 {offsets = [0, 96], sizes = [2, 32], strides = [1, 1]} : vector<2x128xf32> to vector<2x32xf32>
    %341 = math.tanh %340 : vector<2x32xf32>
    %342 = vector.extract_strided_slice %339 {offsets = [0, 0], sizes = [2, 32], strides = [1, 1]} : vector<2x96xf32> to vector<2x32xf32>
    %343 = vector.extract_strided_slice %339 {offsets = [0, 32], sizes = [2, 32], strides = [1, 1]} : vector<2x96xf32> to vector<2x32xf32>
    %344 = vector.extract_strided_slice %339 {offsets = [0, 64], sizes = [2, 32], strides = [1, 1]} : vector<2x96xf32> to vector<2x32xf32>
    %345 = arith.mulf %343, %296 : vector<2x32xf32>
    %346 = arith.mulf %342, %341 : vector<2x32xf32>
    %347 = arith.addf %345, %346 : vector<2x32xf32>
    %348 = math.tanh %347 : vector<2x32xf32>
    %349 = arith.mulf %344, %348 : vector<2x32xf32>
    %350 = arith.index_cast %c6_i32 : i32 to index
    %c0_65 = arith.constant 0 : index
    %c0_66 = arith.constant 0 : index
    %351 = vector.load %arg2[%350, %c0_65, %c0_66] : memref<8x2x64xf32, #tpu.memory_space<vmem>>, vector<1x2x32xf32>
    %352 = vector.shape_cast %351 : vector<1x2x32xf32> to vector<2x32xf32>
    %353 = vector.shape_cast %332 : vector<2x32xf32> to vector<1x2x32xf32>
    tpu.vector_store %arg2[%350, %c0_65, %c0_66], %353 {strides = array<i32>} : memref<8x2x64xf32, #tpu.memory_space<vmem>>, vector<1x2x32xf32>,
    %c7_i32_67 = arith.constant 7 : i32
    %354 = arith.subi %c7_i32_67, %c6_i32 : i32
    %355 = arith.index_cast %354 : i32 to index
    %c0_68 = arith.constant 0 : index
    %c32_69 = arith.constant 32 : index
    %356 = vector.load %arg2[%355, %c0_68, %c32_69] : memref<8x2x64xf32, #tpu.memory_space<vmem>>, vector<1x2x32xf32>
    %357 = vector.shape_cast %356 : vector<1x2x32xf32> to vector<2x32xf32>
    %358 = vector.shape_cast %349 : vector<2x32xf32> to vector<1x2x32xf32>
    tpu.vector_store %arg2[%355, %c0_68, %c32_69], %358 {strides = array<i32>} : memref<8x2x64xf32, #tpu.memory_space<vmem>>, vector<1x2x32xf32>,
    %359 = tpu.concatenate %332, %349 in 1 : vector<2x32xf32>, vector<2x32xf32> -> vector<2x64xf32>
    %c7_i32_70 = arith.constant 7 : i32
    %360 = arith.index_cast %c7_i32_70 : i32 to index
    %c0_71 = arith.constant 0 : index
    %c0_72 = arith.constant 0 : index
    %361 = vector.load %arg0[%360, %c0_71, %c0_72] : memref<8x2x256xbf16, #tpu.memory_space<vmem>>, vector<1x2x256xbf16>
    %362 = vector.shape_cast %361 : vector<1x2x256xbf16> to vector<2x256xbf16>
    %363 = arith.extf %362 : vector<2x256xbf16> to vector<2x256xf32>
    %364 = arith.truncf %359 : vector<2x64xf32> to vector<2x64xbf16>
    %cst_73 = arith.constant dense<0.000000e+00> : vector<2x256xf32>
    %365 = tpu.matmul %364, %0, %cst_73 {dimension_numbers = #tpu.dot_dimension_numbers<[1], [0], [0], [1], [0, 0, 1, 1], [], []>} : vector<2x64xbf16>, vector<64x256xbf16>, vector<2x256xf32> -> vector<2x256xf32>
    %366 = arith.addf %363, %365 : vector<2x256xf32>
    %367 = vector.extract_strided_slice %366 {offsets = [0, 0], sizes = [2, 128], strides = [1, 1]} : vector<2x256xf32> to vector<2x128xf32>
    %368 = vector.extract_strided_slice %367 {offsets = [0, 0], sizes = [2, 96], strides = [1, 1]} : vector<2x128xf32> to vector<2x96xf32>
    %369 = arith.negf %368 : vector<2x96xf32>
    %370 = math.exp %369 : vector<2x96xf32>
    %cst_74 = arith.constant 1.000000e+00 : f32
    %371 = vector.broadcast %cst_74 : f32 to vector<2x96xf32>
    %372 = arith.addf %371, %370 : vector<2x96xf32>
    %373 = arith.divf %371, %372 : vector<2x96xf32>
    %374 = vector.extract_strided_slice %367 {offsets = [0, 96], sizes = [2, 32], strides = [1, 1]} : vector<2x128xf32> to vector<2x32xf32>
    %375 = math.tanh %374 : vector<2x32xf32>
    %376 = vector.extract_strided_slice %373 {offsets = [0, 0], sizes = [2, 32], strides = [1, 1]} : vector<2x96xf32> to vector<2x32xf32>
    %377 = vector.extract_strided_slice %373 {offsets = [0, 32], sizes = [2, 32], strides = [1, 1]} : vector<2x96xf32> to vector<2x32xf32>
    %378 = vector.extract_strided_slice %373 {offsets = [0, 64], sizes = [2, 32], strides = [1, 1]} : vector<2x96xf32> to vector<2x32xf32>
    %379 = arith.mulf %377, %330 : vector<2x32xf32>
    %380 = arith.mulf %376, %375 : vector<2x32xf32>
    %381 = arith.addf %379, %380 : vector<2x32xf32>
    %382 = math.tanh %381 : vector<2x32xf32>
    %383 = arith.mulf %378, %382 : vector<2x32xf32>
    %384 = vector.extract_strided_slice %366 {offsets = [0, 128], sizes = [2, 128], strides = [1, 1]} : vector<2x256xf32> to vector<2x128xf32>
    %385 = vector.extract_strided_slice %384 {offsets = [0, 0], sizes = [2, 96], strides = [1, 1]} : vector<2x128xf32> to vector<2x96xf32>
    %386 = arith.negf %385 : vector<2x96xf32>
    %387 = math.exp %386 : vector<2x96xf32>
    %cst_75 = arith.constant 1.000000e+00 : f32
    %388 = vector.broadcast %cst_75 : f32 to vector<2x96xf32>
    %389 = arith.addf %388, %387 : vector<2x96xf32>
    %390 = arith.divf %388, %389 : vector<2x96xf32>
    %391 = vector.extract_strided_slice %384 {offsets = [0, 96], sizes = [2, 32], strides = [1, 1]} : vector<2x128xf32> to vector<2x32xf32>
    %392 = math.tanh %391 : vector<2x32xf32>
    %393 = vector.extract_strided_slice %390 {offsets = [0, 0], sizes = [2, 32], strides = [1, 1]} : vector<2x96xf32> to vector<2x32xf32>
    %394 = vector.extract_strided_slice %390 {offsets = [0, 32], sizes = [2, 32], strides = [1, 1]} : vector<2x96xf32> to vector<2x32xf32>
    %395 = vector.extract_strided_slice %390 {offsets = [0, 64], sizes = [2, 32], strides = [1, 1]} : vector<2x96xf32> to vector<2x32xf32>
    %396 = arith.mulf %394, %347 : vector<2x32xf32>
    %397 = arith.mulf %393, %392 : vector<2x32xf32>
    %398 = arith.addf %396, %397 : vector<2x32xf32>
    %399 = math.tanh %398 : vector<2x32xf32>
    %400 = arith.mulf %395, %399 : vector<2x32xf32>
    %401 = arith.index_cast %c7_i32_70 : i32 to index
    %c0_76 = arith.constant 0 : index
    %c0_77 = arith.constant 0 : index
    %402 = vector.load %arg2[%401, %c0_76, %c0_77] : memref<8x2x64xf32, #tpu.memory_space<vmem>>, vector<1x2x32xf32>
    %403 = vector.shape_cast %402 : vector<1x2x32xf32> to vector<2x32xf32>
    %404 = vector.shape_cast %383 : vector<2x32xf32> to vector<1x2x32xf32>
    tpu.vector_store %arg2[%401, %c0_76, %c0_77], %404 {strides = array<i32>} : memref<8x2x64xf32, #tpu.memory_space<vmem>>, vector<1x2x32xf32>,
    %c7_i32_78 = arith.constant 7 : i32
    %405 = arith.subi %c7_i32_78, %c7_i32_70 : i32
    %406 = arith.index_cast %405 : i32 to index
    %c0_79 = arith.constant 0 : index
    %c32_80 = arith.constant 32 : index
    %407 = vector.load %arg2[%406, %c0_79, %c32_80] : memref<8x2x64xf32, #tpu.memory_space<vmem>>, vector<1x2x32xf32>
    %408 = vector.shape_cast %407 : vector<1x2x32xf32> to vector<2x32xf32>
    %409 = vector.shape_cast %400 : vector<2x32xf32> to vector<1x2x32xf32>
    tpu.vector_store %arg2[%406, %c0_79, %c32_80], %409 {strides = array<i32>} : memref<8x2x64xf32, #tpu.memory_space<vmem>>, vector<1x2x32xf32>,
    %410 = tpu.concatenate %383, %400 in 1 : vector<2x32xf32>, vector<2x32xf32> -> vector<2x64xf32>
    %c8_i32 = arith.constant 8 : i32
    return
  }
}

module attributes {stable_mosaic.version = 11 : i64} {
  func.func @gx_proj_kernel(%arg0: i32, %arg1: memref<1x2x64xf32, #tpu.memory_space<vmem>>, %arg2: memref<1x2x64xf32, #tpu.memory_space<vmem>>, %arg3: memref<64x128xbf16, #tpu.memory_space<vmem>>, %arg4: memref<64x128xbf16, #tpu.memory_space<vmem>>, %arg5: memref<1x128xf32, #tpu.memory_space<vmem>>, %arg6: memref<1x128xf32, #tpu.memory_space<vmem>>, %arg7: memref<1x2x256xbf16, #tpu.memory_space<vmem>>) attributes {dimension_semantics = [#tpu.dimension_semantics<parallel>], iteration_bounds = array<i64: 8>, scalar_prefetch = 0 : i64, scratch_operands = 0 : i64, tpu.core_type = #tpu.core_type<tc>, window_params = [{transform_indices = @transform_0, window_bounds = array<i64: 1, 2, 64>}, {transform_indices = @transform_1, window_bounds = array<i64: 1, 2, 64>}, {pipeline_mode = #tpu.pipeline_mode<synchronous>, transform_indices = @transform_2, window_bounds = array<i64: 64, 128>}, {pipeline_mode = #tpu.pipeline_mode<synchronous>, transform_indices = @transform_3, window_bounds = array<i64: 64, 128>}, {pipeline_mode = #tpu.pipeline_mode<synchronous>, transform_indices = @transform_4, window_bounds = array<i64: 1, 128>}, {pipeline_mode = #tpu.pipeline_mode<synchronous>, transform_indices = @transform_5, window_bounds = array<i64: 1, 128>}, {transform_indices = @transform_6, window_bounds = array<i64: 1, 2, 256>}]} {
    %c0 = arith.constant 0 : index
    %c0_0 = arith.constant 0 : index
    %c0_1 = arith.constant 0 : index
    %0 = vector.load %arg1[%c0, %c0_0, %c0_1] : memref<1x2x64xf32, #tpu.memory_space<vmem>>, vector<1x2x64xf32>
    %1 = vector.shape_cast %0 : vector<1x2x64xf32> to vector<2x64xf32>
    %2 = arith.truncf %1 : vector<2x64xf32> to vector<2x64xbf16>
    %c0_2 = arith.constant 0 : index
    %c0_3 = arith.constant 0 : index
    %c0_4 = arith.constant 0 : index
    %3 = vector.load %arg2[%c0_2, %c0_3, %c0_4] : memref<1x2x64xf32, #tpu.memory_space<vmem>>, vector<1x2x64xf32>
    %4 = vector.shape_cast %3 : vector<1x2x64xf32> to vector<2x64xf32>
    %5 = arith.truncf %4 : vector<2x64xf32> to vector<2x64xbf16>
    %c0_5 = arith.constant 0 : index
    %c0_6 = arith.constant 0 : index
    %6 = vector.load %arg3[%c0_5, %c0_6] : memref<64x128xbf16, #tpu.memory_space<vmem>>, vector<64x128xbf16>
    %cst = arith.constant dense<0.000000e+00> : vector<2x128xf32>
    %7 = tpu.matmul %2, %6, %cst {dimension_numbers = #tpu.dot_dimension_numbers<[1], [0], [0], [1], [0, 0, 1, 1], [], []>} : vector<2x64xbf16>, vector<64x128xbf16>, vector<2x128xf32> -> vector<2x128xf32>
    %c0_7 = arith.constant 0 : index
    %c0_8 = arith.constant 0 : index
    %8 = vector.load %arg5[%c0_7, %c0_8] : memref<1x128xf32, #tpu.memory_space<vmem>>, vector<1x128xf32>
    %9 = vector.broadcast %8 : vector<1x128xf32> to vector<2x128xf32>
    %10 = arith.addf %7, %9 : vector<2x128xf32>
    %c0_9 = arith.constant 0 : index
    %c0_10 = arith.constant 0 : index
    %11 = vector.load %arg4[%c0_9, %c0_10] : memref<64x128xbf16, #tpu.memory_space<vmem>>, vector<64x128xbf16>
    %cst_11 = arith.constant dense<0.000000e+00> : vector<2x128xf32>
    %12 = tpu.matmul %5, %11, %cst_11 {dimension_numbers = #tpu.dot_dimension_numbers<[1], [0], [0], [1], [0, 0, 1, 1], [], []>} : vector<2x64xbf16>, vector<64x128xbf16>, vector<2x128xf32> -> vector<2x128xf32>
    %c0_12 = arith.constant 0 : index
    %c0_13 = arith.constant 0 : index
    %13 = vector.load %arg6[%c0_12, %c0_13] : memref<1x128xf32, #tpu.memory_space<vmem>>, vector<1x128xf32>
    %14 = vector.broadcast %13 : vector<1x128xf32> to vector<2x128xf32>
    %15 = arith.addf %12, %14 : vector<2x128xf32>
    %16 = arith.truncf %10 : vector<2x128xf32> to vector<2x128xbf16>
    %c0_14 = arith.constant 0 : index
    %c0_15 = arith.constant 0 : index
    %c0_16 = arith.constant 0 : index
    %17 = vector.load %arg7[%c0_14, %c0_15, %c0_16] : memref<1x2x256xbf16, #tpu.memory_space<vmem>>, vector<1x2x128xbf16>
    %18 = vector.shape_cast %17 : vector<1x2x128xbf16> to vector<2x128xbf16>
    %19 = vector.shape_cast %16 : vector<2x128xbf16> to vector<1x2x128xbf16>
    tpu.vector_store %arg7[%c0_14, %c0_15, %c0_16], %19 {strides = array<i32>} : memref<1x2x256xbf16, #tpu.memory_space<vmem>>, vector<1x2x128xbf16>,
    %20 = arith.truncf %15 : vector<2x128xf32> to vector<2x128xbf16>
    %c0_17 = arith.constant 0 : index
    %c0_18 = arith.constant 0 : index
    %c128 = arith.constant 128 : index
    %21 = vector.load %arg7[%c0_17, %c0_18, %c128] : memref<1x2x256xbf16, #tpu.memory_space<vmem>>, vector<1x2x128xbf16>
    %22 = vector.shape_cast %21 : vector<1x2x128xbf16> to vector<2x128xbf16>
    %23 = vector.shape_cast %20 : vector<2x128xbf16> to vector<1x2x128xbf16>
    tpu.vector_store %arg7[%c0_17, %c0_18, %c128], %23 {strides = array<i32>} : memref<1x2x256xbf16, #tpu.memory_space<vmem>>, vector<1x2x128xbf16>,
    return
  }
  func.func @transform_0(%arg0: i32) -> (i32, i32, i32) {
    %c0_i32 = arith.constant 0 : i32
    %c0_i32_0 = arith.constant 0 : i32
    %c0_i32_1 = arith.constant 0 : i32
    return %arg0, %c0_i32, %c0_i32_0 : i32, i32, i32
  }
  func.func @transform_1(%arg0: i32) -> (i32, i32, i32) {
    %c7_i32 = arith.constant 7 : i32
    %0 = arith.subi %c7_i32, %arg0 : i32
    %c0_i32 = arith.constant 0 : i32
    %c0_i32_0 = arith.constant 0 : i32
    %c0_i32_1 = arith.constant 0 : i32
    return %0, %c0_i32, %c0_i32_0 : i32, i32, i32
  }
  func.func @transform_2(%arg0: i32) -> (i32, i32) {
    %c0_i32 = arith.constant 0 : i32
    %c0_i32_0 = arith.constant 0 : i32
    %c0_i32_1 = arith.constant 0 : i32
    return %c0_i32, %c0_i32_0 : i32, i32
  }
  func.func @transform_3(%arg0: i32) -> (i32, i32) {
    %c0_i32 = arith.constant 0 : i32
    %c0_i32_0 = arith.constant 0 : i32
    %c0_i32_1 = arith.constant 0 : i32
    return %c0_i32, %c0_i32_0 : i32, i32
  }
  func.func @transform_4(%arg0: i32) -> (i32, i32) {
    %c0_i32 = arith.constant 0 : i32
    %c0_i32_0 = arith.constant 0 : i32
    %c0_i32_1 = arith.constant 0 : i32
    return %c0_i32, %c0_i32_0 : i32, i32
  }
  func.func @transform_5(%arg0: i32) -> (i32, i32) {
    %c0_i32 = arith.constant 0 : i32
    %c0_i32_0 = arith.constant 0 : i32
    %c0_i32_1 = arith.constant 0 : i32
    return %c0_i32, %c0_i32_0 : i32, i32
  }
  func.func @transform_6(%arg0: i32) -> (i32, i32, i32) {
    %c0_i32 = arith.constant 0 : i32
    %c0_i32_0 = arith.constant 0 : i32
    %c0_i32_1 = arith.constant 0 : i32
    return %arg0, %c0_i32, %c0_i32_0 : i32, i32, i32
  }
}

module attributes {stable_mosaic.version = 11 : i64} {
  func.func @decoder_kernel(%arg0: i32, %arg1: memref<16x64xf32, #tpu.memory_space<vmem>>, %arg2: memref<64x128xf32, #tpu.memory_space<vmem>>, %arg3: memref<1x128xf32, #tpu.memory_space<vmem>>, %arg4: memref<16x128xf32, #tpu.memory_space<vmem>>) attributes {dimension_semantics = [#tpu.dimension_semantics<parallel>], iteration_bounds = array<i64: 1>, scalar_prefetch = 0 : i64, scratch_operands = 0 : i64, tpu.core_type = #tpu.core_type<tc>, window_params = [{transform_indices = @transform_0, window_bounds = array<i64: 16, 64>}, {pipeline_mode = #tpu.pipeline_mode<synchronous>, transform_indices = @transform_1, window_bounds = array<i64: 64, 128>}, {pipeline_mode = #tpu.pipeline_mode<synchronous>, transform_indices = @transform_2, window_bounds = array<i64: 1, 128>}, {transform_indices = @transform_3, window_bounds = array<i64: 16, 128>}]} {
    %c0 = arith.constant 0 : index
    %c0_0 = arith.constant 0 : index
    %0 = vector.load %arg1[%c0, %c0_0] : memref<16x64xf32, #tpu.memory_space<vmem>>, vector<16x64xf32>
    %c0_1 = arith.constant 0 : index
    %c0_2 = arith.constant 0 : index
    %1 = vector.load %arg2[%c0_1, %c0_2] : memref<64x128xf32, #tpu.memory_space<vmem>>, vector<64x128xf32>
    %cst = arith.constant dense<0.000000e+00> : vector<16x128xf32>
    %2 = tpu.matmul %0, %1, %cst {dimension_numbers = #tpu.dot_dimension_numbers<[1], [0], [0], [1], [0, 0, 1, 1], [], []>} : vector<16x64xf32>, vector<64x128xf32>, vector<16x128xf32> -> vector<16x128xf32>
    %c0_3 = arith.constant 0 : index
    %c0_4 = arith.constant 0 : index
    %3 = vector.load %arg3[%c0_3, %c0_4] : memref<1x128xf32, #tpu.memory_space<vmem>>, vector<1x128xf32>
    %4 = vector.broadcast %3 : vector<1x128xf32> to vector<16x128xf32>
    %5 = arith.addf %2, %4 : vector<16x128xf32>
    %c0_5 = arith.constant 0 : index
    %c0_6 = arith.constant 0 : index
    %6 = vector.load %arg4[%c0_5, %c0_6] : memref<16x128xf32, #tpu.memory_space<vmem>>, vector<16x128xf32>
    tpu.vector_store %arg4[%c0_5, %c0_6], %5 {strides = array<i32>} : memref<16x128xf32, #tpu.memory_space<vmem>>, vector<16x128xf32>,
    return
  }
  func.func @transform_0(%arg0: i32) -> (i32, i32) {
    %c0_i32 = arith.constant 0 : i32
    %c0_i32_0 = arith.constant 0 : i32
    return %arg0, %c0_i32 : i32, i32
  }
  func.func @transform_1(%arg0: i32) -> (i32, i32) {
    %c0_i32 = arith.constant 0 : i32
    %c0_i32_0 = arith.constant 0 : i32
    %c0_i32_1 = arith.constant 0 : i32
    return %c0_i32, %c0_i32_0 : i32, i32
  }
  func.func @transform_2(%arg0: i32) -> (i32, i32) {
    %c0_i32 = arith.constant 0 : i32
    %c0_i32_0 = arith.constant 0 : i32
    %c0_i32_1 = arith.constant 0 : i32
    return %c0_i32, %c0_i32_0 : i32, i32
  }
  func.func @transform_3(%arg0: i32) -> (i32, i32) {
    %c0_i32 = arith.constant 0 : i32
    %c0_i32_0 = arith.constant 0 : i32
    return %arg0, %c0_i32 : i32, i32
  }
}

</mosaic_0001>

<bundles_post_ra>
// kernel: ner_forward.5
= control target key start
LH: loop header
LB: loop body
LE: loop exit
PB: predicated region body
PF: predicated region fallthrough
CT: control target
= control target key end

     0   :  { %s577_s21 = smov 0   ;;  %s620_s0 = inlined_call_operand.vmem [shape: f32[8,2,32], index: 0, kind: input, shape index: {}, may-alias: {0,1}]   ;;  %s621_s1 = inlined_call_operand.vmem [shape: f32[8,2,32], index: 1, kind: input, shape index: {}, may-alias: {0,1}]   ;;  %s622_s2 = inlined_call_operand.vmem [shape: bf16[32,128], index: 2, kind: input, shape index: {}]   ;;  %s623_s3 = inlined_call_operand.vmem [shape: bf16[32,128], index: 3, kind: input, shape index: {}]   ;;  %s624_s4 = inlined_call_operand.vmem [shape: f32[1,128], index: 4, kind: input, shape index: {}]   ;;  %s625_s5 = inlined_call_operand.vmem [shape: f32[1,128], index: 5, kind: input, shape index: {}]   ;;  %s626_s6 = inlined_call_operand.vmem [shape: bf16[8,2,256], index: 6, kind: output, shape index: {}]  }
   0x1 LB: > { %s583_s22 = sadd.s32 4294967295, %s538_s21   ;;  %p482_p0 = scmp.ge.s32.totalorder %s538_s21, 1  ;;  %s538_s21 = sphi %s577_s21, %s16_s21  }
   0x2   : > { %p224_p1 = scmp.lt.s32.totalorder %s538_s21, 9 }
   0x4   : > { %p225_p2 = pnand %p482_p0, %p224_p1 }
   0x5   : > { %v528_v0 = vld [vmem:[%s622_s2] sm:$0xff] (!%p225_p2)   ;;  %v540_v1 = vmov (!%p225_p2), 0.0   ;;  %v530_v3 = vld [vmem:[%s622_s2 + $0x8] sm:$0xff] (!%p225_p2)   ;;  %vm541_vm0 = vmmov (!%p225_p2), 0   ;;  %p257_p3 = scmp.lt.s32.totalorder (!%p225_p2), %s583_s22, 7  ;;  %s261_s8 = ssub.s32 (!%p225_p2), 7, %s583_s22 }
   0x6   : > { %228 = sbr.rel (%p225_p2) target bundleno = 238 (0xee), region = 44  ;;  %502 = vmatprep.subr.bf16.mxu0 (!%p225_p2), %v540_v1  ;;  %510 = vmatprep.subr.bf16.mxu1 (!%p225_p2), %v540_v1  ;;  %v529_v2 = vld [vmem:[%s623_s3] sm:$0xff] (!%p225_p2)   ;;  %v531_v4 = vld [vmem:[%s623_s3 + $0x8] sm:$0xff] (!%p225_p2)   ;;  %p262_p4 = scmp.lt.s32.totalorder (!%p225_p2), %s261_s8, 7  ;;  %vm299_vm1 = vcmask (!%p225_p2), 261120  }
   0x7   : > { %503 = vmatpush3.bf16.msra.mxu0 (!%p225_p2), %v528_v0  ;;  %506 = vmatprep.mubr.msk.bf16.mxu0 (!%p225_p2), %vm541_vm0, %v540_v1  ;;  %v486_v9 = vld [vmem:[%s624_s4] ss:$0 sm:$0xff] (!%p225_p2) }
   0x8   : > { %511 = vmatpush3.bf16.msra.mxu1 (!%p225_p2), %v529_v2  ;;  %504 = vmatprep.subr.bf16.mxu0 (!%p225_p2), %v540_v1  ;;  %v490_v13 = vld [vmem:[%s625_s5] ss:$0 sm:$0xff] (!%p225_p2) }
   0x9   : > { %512 = vmatprep.subr.bf16.mxu1 (!%p225_p2), %v540_v1  ;;  %514 = vmatprep.mubr.msk.bf16.mxu1 (!%p225_p2), %vm541_vm0, %v540_v1 }
   0xb   : > { %505 = vmatpush3.bf16.msra.mxu0 (!%p225_p2), %v530_v3 }
   0xc   : > { %513 = vmatpush3.bf16.msra.mxu1 (!%p225_p2), %v531_v4 }
   0xd   : > { %s258_s7 = scalar_select %p257_p3, %s583_s22, 7 }
   0xe   : > { %s628_s8 = smov (!%p262_p4, %s261_s8), 7 }
   0xf   : > { %s483_s9 = sshll.u32 %s258_s7, 1  ;;  %s484_s13 = sshll.u32 %s628_s8, 1 }
  0x10   : > { %s260_s12 = scalar_lea.vmem %s620_s0, %s483_s9  ;;  %s265_s16 = scalar_lea.vmem %s621_s1, %s484_s13 }
  0x11   : > { %v272_v5 = vld [vmem:[%s260_s12] sm:$0x3]  ;;  %s270_s22 = scalar_lea.vmem %s626_s6, %s483_s9 }
  0x12   : > { %v273_v6 = vpack.c.bf16 %v272_v5, %v272_v5  ;;  %v274_v7 = vld [vmem:[%s265_s16] sm:$0x3] }
  0x13   : > { %v275_v8 = vpack.c.bf16 %v274_v7, %v274_v7 }
  0x14   : > { %507 = vmatmul.mubr.msk.bf16.vlgmr.msra.gmra.mrb[0].mxu0 %vm299_vm1, %v273_v6 }
  0x15   : > { %515 = vmatmul.mubr.msk.bf16.vlgmr.msra.gmra.mrb[0].mxu1 %vm299_vm1, %v275_v8 }
  0xe7   : > { %v337_v10 = vpop.f32.mrb[0].mxu0 }
  0xe8   : > { %v338_v11 = vadd.f32 %v486_v9, %v337_v10  ;;  %v508_v12 = vpop.f32.mrb[1].mxu0  ;;  %v403_v17 = vpop.f32.mrb[0].mxu1 }
  0xe9   : > { %v340_v14 = vpop.f32.mrb[2].mxu0  ;;  %v404_v18 = vadd.f32 %v490_v13, %v403_v17  ;;  %v516_v19 = vpop.f32.mrb[1].mxu1 }
  0xea   : > { %v409_v15 = vpack.c.bf16 %v338_v11, %v338_v11  ;;  %v509_v16 = vpop.f32.mrb[3].mxu0  ;;  %v406_v20 = vpop.f32.mrb[2].mxu1 }
  0xeb   : > { %v411_v21 = vpack.c.bf16 %v404_v18, %v404_v18  ;;  %v517_v22 = vpop.f32.mrb[3].mxu1 }
  0xec   : > { %410 = vst [vmem:[%s270_s22] sm:$0x1] %v409_v15 }
  0xed   : > { %412 = vst [vmem:[%s270_s22 + $0x1] sm:$0x1] %v411_v21 }
  0xee PF: > { %s16_s21 = sadd.s32 1, %s538_s21  }
  0xef   : > { %p13_p5 = scmp.ge.s32.totalorder %s16_s21, 10  }
  0xf1   :  { %15 = sbr.rel (!%p13_p5) target bundleno = 1 (0x1), region = 77 }

// kernel: ner_forward.9
= control target key start
LH: loop header
LB: loop body
LE: loop exit
PB: predicated region body
PF: predicated region fallthrough
CT: control target
= control target key end

     0   :  { %vm32_vm0 = vcmask 523264   ;;  %s277_s0 = inlined_call_operand.vmem [shape: f32[16,64], index: 0, kind: input, shape index: {}]   ;;  %s278_s1 = inlined_call_operand.vmem [shape: f32[64,128], index: 1, kind: input, shape index: {}]   ;;  %s279_s2 = inlined_call_operand.vmem [shape: f32[1,128], index: 2, kind: input, shape index: {}]   ;;  %s280_s3 = inlined_call_operand.hbm [shape: f32[16,128], index: 3, kind: output, shape index: {}]  }
   0x1   :  { %v17_v0 = vld [vmem:[%s278_s1] sm:$0xff]  ;;  %v18_v1 = vld [vmem:[%s278_s1 + $0x8] sm:$0xff]  ;;  %v19_v2 = vld [vmem:[%s278_s1 + $0x10] sm:$0xff] }
   0x2   :  { %v164_v3 = vpack.c.bf16 %v18_v1, %v17_v0  ;;  %v20_v4 = vld [vmem:[%s278_s1 + $0x18] sm:$0xff]  ;;  %v21_v6 = vld [vmem:[%s278_s1 + $0x20] sm:$0xff]  ;;  %v22_v7 = vld [vmem:[%s278_s1 + $0x28] sm:$0xff] }
   0x3   :  { %v168_v5 = vpack.c.bf16 %v20_v4, %v19_v2  ;;  %v15_v8 = vld [vmem:[%s277_s0] sm:$0xff] }
   0x4   :  { %165 = vmatprep.subr.bf16.mxu0 %v164_v3  ;;  %161 = vmatprep.mubr.msk.f32.mxu0 %vm32_vm0, %v15_v8 }
   0x5   :  { %8 = vsyncpa [#allocation3], 0  ;;  %167 = vmatpush3.bf16.msra.mxu0 %v164_v3  ;;  %v172_v9 = vpack.c.bf16 %v22_v7, %v21_v6  ;;  %v23_v10 = vld [vmem:[%s278_s1 + $0x30] sm:$0xff]  ;;  %v24_v11 = vld [vmem:[%s278_s1 + $0x38] sm:$0xff]  ;;  %s207_s7 = smov [#allocation2]  }
   0x6   :  { %169 = vmatprep.subr.bf16.mxu0 %v168_v5  ;;  %v176_v12 = vpack.c.bf16 %v24_v11, %v23_v10  ;;  %v16_v13 = vld [vmem:[%s277_s0 + $0x8] sm:$0xff]  ;;  %v132_v14 = vld [vmem:[%s279_s2] ss:$0 sm:$0xff]  ;;  %s121_s8 = sshll.u32 %s207_s7, 4  ;;  %s122_s8 = int_to_ptr.vmem [resolvable:$true] %s121_s8 }
   0x7   :  { %s183_s1 = scalar_lea.vmem %s122_s8, 256  ;;  %p188_p1 = scmp.lt.s32.totalorder %s122_s8, %s122_s8 }
   0x8   :  { %p184_p0 = scmp.ne.s32.totalorder %s122_s8, %s183_s1  ;;  %p189_p2 = scmp.lt.s32.totalorder %s183_s1, %s183_s1 }
   0x9   :  { %171 = vmatpush3.bf16.msra.mxu0 %v168_v5 }
   0xa   :  { %173 = vmatprep.subr.bf16.mxu0 %v172_v9  ;;  %p190_p3 = por %p189_p2, %p188_p1 }
   0xc   :  { %p191_p4 = pnand %p190_p3, %p184_p0 }
   0xd   :  { %175 = vmatpush3.bf16.msra.mxu0 %v172_v9 }
   0xe   :  { %177 = vmatprep.subr.bf16.mxu0 %v176_v12 }
  0x11   :  { %179 = vmatpush3.bf16.msra.mxu0 %v176_v12 }
  0x14   :  { %162 = vmatmul.mubr.msk.f32.vlgmr.msra.gmra.mrb[0].mxu0 %vm32_vm0, %v16_v13 }
  0xe7   :  { %v163_v15 = vpop.f32.mrb[0].mxu0 }
  0xe8   :  { %v111_v16 = vadd.f32 %v163_v15, %v132_v14  ;;  %v105_v17 = vpop.f32.mrb[1].mxu0 }
  0xe9   :  { %v106_v18 = vadd.f32 %v132_v14, %v105_v17 }
  0xea   :  { %115 = vst [vmem:[#allocation2 + $0x8] sm:$0xff] %v111_v16 }
  0xeb   :  { %114 = vst [vmem:[#allocation2] sm:$0xff] %v106_v18 }
  0xec   :  { %194 = shalt.err (!%p191_p4)
}
  0xed   :  { %s195_s2 = scalar_lea.hbm %s280_s3, 256 }
  0xee   :  { %p196_p5 = scmp.ne.s32.totalorder %s280_s3, %s195_s2  ;;  %p199_p6 = scmp.lt.u32.totalorder %s195_s2, %s280_s3 }
  0xf0   :  { %p201_p7 = pnand %p199_p6, %p196_p5 }
  0xf2   :  { %204 = shalt.err (!%p201_p7)
}
  0xf3   :  { %s208_s14 = smov 128   ;;  %s209_s15 = smov 8  }
  0xf4   :  { %127 = dma.vmem_to_hbm [thread:$0]  %s122_s8, 256, %s280_s3, [#allocation3], %s208_s14, %s208_s14, %s209_s15  }
  0xf5   :  { %205 = dma.done.wait [#allocation3], 256  }
  0xf6   :  { %206 = vsyncadd [#allocation3], 4294967040 }
  0xf7   :  { %131 = vsyncpa [#allocation3], 1 }

// kernel: ner_forward.7
= control target key start
LH: loop header
LB: loop body
LE: loop exit
PB: predicated region body
PF: predicated region fallthrough
CT: control target
= control target key end

     0   :  { %s629_s21 = smov 0   ;;  %s691_s0 = inlined_call_operand.vmem [shape: f32[8,2,64], index: 0, kind: input, shape index: {}, may-alias: {0,1}]   ;;  %s692_s1 = inlined_call_operand.vmem [shape: f32[8,2,64], index: 1, kind: input, shape index: {}, may-alias: {0,1}]   ;;  %s693_s2 = inlined_call_operand.vmem [shape: bf16[64,128], index: 2, kind: input, shape index: {}]   ;;  %s694_s3 = inlined_call_operand.vmem [shape: bf16[64,128], index: 3, kind: input, shape index: {}]   ;;  %s695_s4 = inlined_call_operand.vmem [shape: f32[1,128], index: 4, kind: input, shape index: {}]   ;;  %s696_s5 = inlined_call_operand.vmem [shape: f32[1,128], index: 5, kind: input, shape index: {}]   ;;  %s697_s6 = inlined_call_operand.vmem [shape: bf16[8,2,256], index: 6, kind: output, shape index: {}]  }
   0x1 LB: > { %s635_s22 = sadd.s32 4294967295, %s590_s21   ;;  %p514_p0 = scmp.ge.s32.totalorder %s590_s21, 1  ;;  %s590_s21 = sphi %s629_s21, %s16_s21  }
   0x2   : > { %p224_p1 = scmp.lt.s32.totalorder %s590_s21, 9 }
   0x4   : > { %p225_p2 = pnand %p514_p0, %p224_p1 }
   0x5   : > { %v576_v0 = vld [vmem:[%s693_s2] sm:$0xff] (!%p225_p2)   ;;  %v592_v1 = vmov (!%p225_p2), 0.0   ;;  %v578_v3 = vld [vmem:[%s693_s2 + $0x8] sm:$0xff] (!%p225_p2)   ;;  %vm593_vm0 = vmmov (!%p225_p2), 0   ;;  %p257_p3 = scmp.lt.s32.totalorder (!%p225_p2), %s635_s22, 7  ;;  %s261_s8 = ssub.s32 (!%p225_p2), 7, %s635_s22 }
   0x6   : > { %228 = sbr.rel (%p225_p2) target bundleno = 240 (0xf0), region = 44  ;;  %542 = vmatprep.subr.bf16.mxu0 (!%p225_p2), %v592_v1  ;;  %554 = vmatprep.subr.bf16.mxu1 (!%p225_p2), %v592_v1  ;;  %v577_v2 = vld [vmem:[%s694_s3] sm:$0xff] (!%p225_p2)   ;;  %v579_v4 = vld [vmem:[%s694_s3 + $0x8] sm:$0xff] (!%p225_p2)   ;;  %v580_v5 = vld [vmem:[%s693_s2 + $0x10] sm:$0xff] (!%p225_p2)   ;;  %p262_p4 = scmp.lt.s32.totalorder (!%p225_p2), %s261_s8, 7  ;;  %vm315_vm1 = vcmask (!%p225_p2), 523264  }
   0x7   : > { %543 = vmatpush3.bf16.msra.mxu0 (!%p225_p2), %v576_v0  ;;  %550 = vmatprep.mubr.msk.bf16.mxu0 (!%p225_p2), %vm593_vm0, %v592_v1  ;;  %v581_v6 = vld [vmem:[%s694_s3 + $0x10] sm:$0xff] (!%p225_p2)   ;;  %v582_v7 = vld [vmem:[%s693_s2 + $0x18] sm:$0xff] (!%p225_p2)   ;;  %v518_v13 = vld [vmem:[%s695_s4] ss:$0 sm:$0xff] (!%p225_p2) }
   0x8   : > { %555 = vmatpush3.bf16.msra.mxu1 (!%p225_p2), %v577_v2  ;;  %544 = vmatprep.subr.bf16.mxu0 (!%p225_p2), %v592_v1  ;;  %v583_v9 = vld [vmem:[%s694_s3 + $0x18] sm:$0xff] (!%p225_p2)   ;;  %v524_v14 = vld [vmem:[%s696_s5] ss:$0 sm:$0xff] (!%p225_p2) }
   0x9   : > { %556 = vmatprep.subr.bf16.mxu1 (!%p225_p2), %v592_v1  ;;  %562 = vmatprep.mubr.msk.bf16.mxu1 (!%p225_p2), %vm593_vm0, %v592_v1 }
   0xb   : > { %545 = vmatpush3.bf16.msra.mxu0 (!%p225_p2), %v578_v3 }
   0xc   : > { %557 = vmatpush3.bf16.msra.mxu1 (!%p225_p2), %v579_v4  ;;  %546 = vmatprep.subr.bf16.mxu0 (!%p225_p2), %v592_v1 }
   0xd   : > { %s653_s7 = scalar_select %p257_p3, %s635_s22, 7  ;;  %558 = vmatprep.subr.bf16.mxu1 %v592_v1 }
   0xe   : > { %s699_s8 = smov (!%p262_p4, %s261_s8), 7 }
   0xf   : > { %s515_s11 = sshll.u32 %s653_s7, 1  ;;  %547 = vmatpush3.bf16.msra.mxu0 %v580_v5  ;;  %s516_s22 = sshll.u32 %s699_s8, 1 }
  0x10   : > { %s260_s16 = scalar_lea.vmem %s691_s0, %s515_s11  ;;  %559 = vmatpush3.bf16.msra.mxu1 %v581_v6  ;;  %548 = vmatprep.subr.bf16.mxu0 %v592_v1  ;;  %s265_s25 = scalar_lea.vmem %s692_s1, %s516_s22 }
  0x11   : > { %v272_v8 = vld [vmem:[%s260_s16] sm:$0x3]  ;;  %560 = vmatprep.subr.bf16.mxu1 %v592_v1  ;;  %s270_s9 = scalar_lea.vmem %s697_s6, %s515_s11 }
  0x12   : > { %v273_v10 = vpack.c.bf16 %v272_v8, %v272_v8  ;;  %v274_v11 = vld [vmem:[%s265_s25] sm:$0x3] }
  0x13   : > { %549 = vmatpush3.bf16.msra.mxu0 %v582_v7  ;;  %v275_v12 = vpack.c.bf16 %v274_v11, %v274_v11 }
  0x14   : > { %561 = vmatpush3.bf16.msra.mxu1 %v583_v9 }
  0x16   : > { %551 = vmatmul.mubr.msk.bf16.vlgmr.msra.gmra.mrb[0].mxu0 %vm315_vm1, %v273_v10 }
  0x17   : > { %563 = vmatmul.mubr.msk.bf16.vlgmr.msra.gmra.mrb[0].mxu1 %vm315_vm1, %v275_v12 }
  0xe9   : > { %v353_v15 = vpop.f32.mrb[0].mxu0 }
  0xea   : > { %v354_v16 = vadd.f32 %v518_v13, %v353_v15  ;;  %v435_v17 = vpop.f32.mrb[0].mxu1  ;;  %v552_v18 = vpop.f32.mrb[1].mxu0 }
  0xeb   : > { %v436_v19 = vadd.f32 %v524_v14, %v435_v17  ;;  %v564_v20 = vpop.f32.mrb[1].mxu1  ;;  %v356_v21 = vpop.f32.mrb[2].mxu0 }
  0xec   : > { %v441_v22 = vpack.c.bf16 %v354_v16, %v354_v16  ;;  %v438_v23 = vpop.f32.mrb[2].mxu1  ;;  %v553_v24 = vpop.f32.mrb[3].mxu0 }
  0xed   : > { %v443_v25 = vpack.c.bf16 %v436_v19, %v436_v19  ;;  %v565_v26 = vpop.f32.mrb[3].mxu1 }
  0xee   : > { %442 = vst [vmem:[%s270_s9] sm:$0x1] %v441_v22 }
  0xef   : > { %444 = vst [vmem:[%s270_s9 + $0x1] sm:$0x1] %v443_v25 }
  0xf0 PF: > { %s16_s21 = sadd.s32 1, %s590_s21  }
  0xf1   : > { %p13_p5 = scmp.ge.s32.totalorder %s16_s21, 10  }
  0xf3   :  { %15 = sbr.rel (!%p13_p5) target bundleno = 1 (0x1), region = 77 }

// kernel: ner_forward.6
= control target key start
LH: loop header
LB: loop body
LE: loop exit
PB: predicated region body
PF: predicated region fallthrough
CT: control target
= control target key end

     0   :  { %v1357_v1 = vmov 0   ;;  %v1358_v9 = vmov 1983009808   ;;  %v113_v11 = vlaneseq  ;;  %s1359_s26 = smov 32   ;;  %s1360_s27 = smov 64   ;;  %vm181_vm0 = vcmask 254976   ;;  %s1722_s1 = inlined_call_operand.vmem [shape: bf16[64,256], index: 1, kind: input, shape index: {}]   ;;  %s1723_s0 = inlined_call_operand.vmem [shape: bf16[8,2,256], index: 0, kind: input, shape index: {}]   ;;  %s1724_s2 = inlined_call_operand.vmem [shape: f32[8,2,64], index: 2, kind: output, shape index: {}]  }
   0x1   :  { %v1380_v0 = vld [vmem:[%s1722_s1 + $0x4] ss:$8 sps:$4 sm:$0xff]   ;;  %98 = vmatprep.mubr.bf16.mxu0 %v1357_v1  ;;  %238 = vmatprep.mubr.bf16.mxu1 %v1357_v1  ;;  %v1387_v2 = vld [vmem:[%s1722_s1] ss:$8 sps:$4 sm:$0xff]   ;;  %v1393_v3 = vld [vmem:[%s1722_s1 + $0x14] ss:$8 sps:$4 sm:$0xff]   ;;  %v111_v10 = vunpack.c.l.s4 %v1358_v9 }
   0x2   :  { %66 = vmatprep.subr.bf16.mxu0 %v1380_v0  ;;  %206 = vmatprep.subr.bf16.mxu1 %v1380_v0  ;;  %v1400_v4 = vld [vmem:[%s1722_s1 + $0x10] ss:$8 sps:$4 sm:$0xff]   ;;  %v1407_v5 = vld [vmem:[%s1722_s1 + $0x24] ss:$8 sps:$4 sm:$0xff]   ;;  %v1414_v6 = vld [vmem:[%s1722_s1 + $0x20] ss:$8 sps:$4 sm:$0xff]  }
   0x3   :  { %67 = vmatpush1.bf16.msra.mxu0 %v1387_v2  ;;  %207 = vmatpush1.bf16.msra.mxu1 %v1387_v2  ;;  %v1421_v7 = vld [vmem:[%s1722_s1 + $0x34] ss:$8 sps:$4 sm:$0xff]   ;;  %v1428_v8 = vld [vmem:[%s1722_s1 + $0x30] ss:$8 sps:$4 sm:$0xff]   ;;  %v112_v12 = vunpack.c.0.s8 %v111_v10  ;;  %v114_v13 = vshrl.u32 %v113_v11, 7  ;;  %s1361_s28 = smov 96  }
   0x4   :  { %68 = vmatprep.subr.bf16.mxu0 %v1393_v3  ;;  %208 = vmatprep.subr.bf16.mxu1 %v1393_v3  ;;  %v20_v14 = vld [vmem:[%s1723_s0] sm:$0x3]  ;;  %vm195_vm1 = vcmask 517376   ;;  %vm197_vm2 = vcmask 261120   ;;  %vm62_vm3 = vcmask 523264  }
   0x5   :  { %v1450_v16 = vsub.s32 %v112_v12, %v114_v13  ;;  %v21_v18 = vunpack.c.l.bf16 %v20_v14  ;;  %v1171_v58 = vld [vmem:[%s1723_s0 + $0x2] sm:$0x3] }
   0x6   :  { %v201_v61 = vunpack.c.l.bf16 %v1171_v58 }
   0x7   :  { %69 = vmatpush1.bf16.msra.mxu0 %v1400_v4  ;;  %209 = vmatpush1.bf16.msra.mxu1 %v1400_v4 }
   0x8   :  { %70 = vmatprep.subr.bf16.mxu0 %v1407_v5  ;;  %210 = vmatprep.subr.bf16.mxu1 %v1407_v5 }
   0xb   :  { %71 = vmatpush1.bf16.msra.mxu0 %v1414_v6  ;;  %211 = vmatpush1.bf16.msra.mxu1 %v1414_v6 }
   0xc   :  { %72 = vmatprep.subr.bf16.mxu0 %v1421_v7  ;;  %212 = vmatprep.subr.bf16.mxu1 %v1421_v7 }
   0xf   :  { %73 = vmatpush1.bf16.msra.mxu0 %v1428_v8  ;;  %213 = vmatpush1.bf16.msra.mxu1 %v1428_v8 }
  0x10   :  { %344 = vmatprep.subr.bf16.mxu0 %v1380_v0  ;;  %482 = vmatprep.subr.bf16.mxu1 %v1380_v0 }
  0x12   :  { %99 = vmatmul.mubr.bf16.vlgmr.msra.gmra.mrb[0].mxu0 %v1357_v1 }
  0x13   :  { %345 = vmatpush1.bf16.msra.mxu0 %v1387_v2  ;;  %376 = vmatprep.mubr.bf16.mxu0 %v1357_v1 }
  0x14   :  { %346 = vmatprep.subr.bf16.mxu0 %v1393_v3 }
  0x17   :  { %347 = vmatpush1.bf16.msra.mxu0 %v1400_v4 }
  0x18   :  { %348 = vmatprep.subr.bf16.mxu0 %v1407_v5 }
  0x1b   :  { %349 = vmatpush1.bf16.msra.mxu0 %v1414_v6 }
  0x1c   :  { %350 = vmatprep.subr.bf16.mxu0 %v1421_v7 }
  0x1f   :  { %351 = vmatpush1.bf16.msra.mxu0 %v1428_v8 }
  0x20   :  { %620 = vmatprep.subr.bf16.mxu0 %v1380_v0 }
  0xe5   :  { %v100_v15 = vpop.f32.mrb[0].mxu0 }
  0xe6   :  { %v102_v17 = vpop.f32.mrb[1].mxu0 }
  0xe7   :  { %v109_v19 = vcombine.low %v100_v15, %v102_v17  ;;  %v104_v20 = vpop.f32.mrb[2].mxu0 }
  0xe8   :  { %v105_v21 = vpop.f32.mrb[3].mxu0 }
  0xe9   :  { %v116_v22 = vrot.slane %v109_v19, %v1450_v16 }
  0xeb   :  { %v118_v23 = vadd.f32 %v116_v22, %v21_v18 }
  0xed   :  { %1229 = vtanh.f32 %v118_v23  ;;  %152 = vrot.lane.b32.xlu0 %v118_v23, %s1359_s26  ;;  %v1168_v25 = vmul.f32 -1.442695, %v118_v23  ;;  %v144_v26 = vrot.slane %v118_v23, 2 }
  0xef   :  { %1231 = vpow2.f32 %v1168_v25  ;;  %v1169_v27 = vmul.f32 -1.442695, %v144_v26 }
  0xf1   :  { %1233 = vpow2.f32 %v1169_v27 }
  0xf7   :  { %v1230_v24 = vpop.eup %1229 }
  0xf8   :  { %128 = vrot.lane.b32.xlu0 %v1230_v24, %s1359_s26 }
  0xf9   :  { %v1232_v28 = vpop.eup %1231 }
  0xfa   :  { %v122_v29 = vadd.f32 1.0, %v1232_v28 }
  0xfb   :  { %v1234_v30 = vpop.eup %1233 }
  0xfc   :  { %1235 = vrcp.f32 %v122_v29  ;;  %v149_v32 = vadd.f32 1.0, %v1234_v30 }
 0x106   :  { %v1236_v34 = vpop.eup %1235 }
 0x107   :  { %v126_v40 = vmul.f32 0.0, %v1236_v34 }
 0x15f   :  { %v153_v31 = vpop.permute.xlu0 %152 }
 0x160   :  { %v154_v33 = vrot.slane %v153_v31, 2 }
 0x162   :  { %1237 = vtanh.f32 %v154_v33 }
 0x163   :  { %1239 = vrcp.f32 %v149_v32 }
 0x16a   :  { %v129_v35 = vpop.permute.xlu0 %128 }
 0x16b   :  { %v131_v36 = vmul.f32 %v1236_v34, %v129_v35 }
 0x16c   :  { %v1238_v37 = vpop.eup %1237 }
 0x16d   :  { %133 = vrot.lane.b32.xlu1 %v131_v36, %s1359_s26  ;;  %v1240_v38 = vpop.eup %1239 }
 0x16e   :  { %v158_v39 = vmul.f32 %v1240_v38, %v1238_v37  ;;  %v157_v43 = vmul.f32 0.0, %v1240_v38 }
 0x171   :  { %160 = vrot.lane.b32.xlu1 %v158_v39, %s1359_s26 }
 0x1df   :  { %v134_v41 = vpop.permute.xlu1 %133 }
 0x1e0   :  { %v1457_v42 = vadd.f32 %v134_v41, %v126_v40 }
 0x1e2   :  { %1241 = vtanh.f32 %v1457_v42 }
 0x1e3   :  { %v161_v44 = vpop.permute.xlu1 %160 }
 0x1e4   :  { %v1460_v45 = vadd.f32 %v161_v44, %v157_v43 }
 0x1e6   :  { %1243 = vtanh.f32 %v1460_v45 }
 0x1ec   :  { %v1242_v46 = vpop.eup %1241 }
 0x1ed   :  { %139 = vrot.lane.b32.xlu0 %v1242_v46, %s1359_s26 }
 0x1f0   :  { %v1244_v47 = vpop.eup %1243 }
 0x1f1   :  { %166 = vrot.lane.b32.xlu1 %v1244_v47, %s1359_s26  ;;  %v1177_v47 = vld [vmem:[%s1723_s0 + $0x4] sm:$0x3] }
 0x25f   :  { %v140_v48 = vpop.permute.xlu0 %139 }
 0x260   :  { %v142_v49 = vmul.f32 %v1236_v34, %v140_v48 }
 0x262   :  { %v177_v50 = vrot.slane %v142_v49, %v1450_v16 }
 0x263   :  { %v167_v51 = vpop.permute.xlu1 %166 }
 0x264   :  { %v169_v52 = vmul.f32 %v1240_v38, %v167_v51  ;;  %178 = vrot.lane.b32.xlu0 %v177_v50, %s1360_s27  ;;  %v339_v50 = vunpack.c.l.bf16 %v1177_v47 }
 0x266   :  { %v190_v53 = vrot.slane %v169_v52, %v1450_v16 }
 0x268   :  { %191 = vrot.lane.b32.xlu1 %v190_v53, %s1361_s28 }
 0x2d6   :  { %v179_v54 = vpop.permute.xlu0 %178 }
 0x2d7   :  { %182 = vst.msk [vmem:[%s1724_s2] sm:$0x3] %vm181_vm0, %v179_v54 }
 0x2da   :  { %v192_v55 = vpop.permute.xlu1 %191 }
 0x2db   :  { %1170 = vst.msk [vmem:[%s1724_s2 + $0xe] sm:$0x3] %vm195_vm1, %v192_v55  ;;  %v198_v56 = vsel %vm197_vm2, %v179_v54, %v192_v55 }
 0x2dc   :  { %v202_v57 = vpack.c.bf16 %v198_v56, %v198_v56 }
 0x2de   :  { %1172 = vmatmul.mubr.msk.bf16.vlgmr.msra.gmra.mrb[0].mxu1 %vm62_vm3, %v202_v57 }
 0x2df   :  { %483 = vmatpush1.bf16.msra.mxu1 %v1387_v2  ;;  %514 = vmatprep.mubr.bf16.mxu1 %v1357_v1 }
 0x2e0   :  { %484 = vmatprep.subr.bf16.mxu1 %v1393_v3 }
 0x2e3   :  { %485 = vmatpush1.bf16.msra.mxu1 %v1400_v4 }
 0x2e4   :  { %486 = vmatprep.subr.bf16.mxu1 %v1407_v5 }
 0x2e7   :  { %487 = vmatpush1.bf16.msra.mxu1 %v1414_v6 }
 0x2e8   :  { %488 = vmatprep.subr.bf16.mxu1 %v1421_v7 }
 0x2eb   :  { %489 = vmatpush1.bf16.msra.mxu1 %v1428_v8 }
 0x2ec   :  { %756 = vmatprep.subr.bf16.mxu1 %v1380_v0 }
 0x3b1   :  { %v240_v59 = vpop.f32.mrb[0].mxu1 }
 0x3b2   :  { %v242_v60 = vpop.f32.mrb[1].mxu1 }
 0x3b3   :  { %v249_v62 = vcombine.low %v240_v59, %v242_v60  ;;  %v244_v63 = vpop.f32.mrb[2].mxu1 }
 0x3b4   :  { %v245_v9 = vpop.f32.mrb[3].mxu1 }
 0x3b5   :  { %v256_v10 = vrot.slane %v249_v62, %v1450_v16 }
 0x3b7   :  { %v258_v11 = vadd.f32 %v256_v10, %v201_v61 }
 0x3b9   :  { %1245 = vtanh.f32 %v258_v11  ;;  %292 = vrot.lane.b32.xlu0 %v258_v11, %s1359_s26  ;;  %v284_v13 = vrot.slane %v258_v11, 2  ;;  %v1173_v14 = vmul.f32 -1.442695, %v258_v11 }
 0x3bb   :  { %v1174_v15 = vmul.f32 -1.442695, %v284_v13  ;;  %1247 = vpow2.f32 %v1173_v14 }
 0x3bd   :  { %1249 = vpow2.f32 %v1174_v15 }
 0x3c3   :  { %v1246_v12 = vpop.eup %1245 }
 0x3c4   :  { %268 = vrot.lane.b32.xlu1 %v1246_v12, %s1359_s26 }
 0x3c5   :  { %v1248_v17 = vpop.eup %1247 }
 0x3c6   :  { %v262_v19 = vadd.f32 1.0, %v1248_v17 }
 0x3c7   :  { %v1250_v18 = vpop.eup %1249 }
 0x3c8   :  { %v289_v20 = vadd.f32 1.0, %v1250_v18  ;;  %1251 = vrcp.f32 %v262_v19 }
 0x3ca   :  { %1253 = vrcp.f32 %v289_v20 }
 0x3d2   :  { %v1252_v23 = vpop.eup %1251 }
 0x3d3   :  { %v266_v29 = vmul.f32 %v1252_v23, %v1457_v42 }
 0x3d4   :  { %v1254_v25 = vpop.eup %1253 }
 0x3d5   :  { %v297_v32 = vmul.f32 %v1254_v25, %v1460_v45 }
 0x42b   :  { %v293_v21 = vpop.permute.xlu0 %292 }
 0x42c   :  { %v294_v22 = vrot.slane %v293_v21, 2 }
 0x42e   :  { %1255 = vtanh.f32 %v294_v22 }
 0x436   :  { %v269_v24 = vpop.permute.xlu1 %268 }
 0x437   :  { %v271_v26 = vmul.f32 %v1252_v23, %v269_v24 }
 0x438   :  { %v1256_v27 = vpop.eup %1255 }
 0x439   :  { %273 = vrot.lane.b32.xlu0 %v271_v26, %s1359_s26  ;;  %v298_v28 = vmul.f32 %v1256_v27, %v1254_v25 }
 0x43b   :  { %300 = vrot.lane.b32.xlu1 %v298_v28, %s1359_s26 }
 0x4ab   :  { %v274_v30 = vpop.permute.xlu0 %273 }
 0x4ac   :  { %v1497_v31 = vadd.f32 %v274_v30, %v266_v29 }
 0x4ad   :  { %v301_v33 = vpop.permute.xlu1 %300 }
 0x4ae   :  { %1257 = vtanh.f32 %v1497_v31  ;;  %v1501_v34 = vadd.f32 %v301_v33, %v297_v32 }
 0x4b0   :  { %1259 = vtanh.f32 %v1501_v34 }
 0x4b8   :  { %v1258_v35 = vpop.eup %1257 }
 0x4b9   :  { %279 = vrot.lane.b32.xlu0 %v1258_v35, %s1359_s26 }
 0x4ba   :  { %v1260_v36 = vpop.eup %1259 }
 0x4bb   :  { %306 = vrot.lane.b32.xlu1 %v1260_v36, %s1359_s26  ;;  %v1183_v36 = vld [vmem:[%s1723_s0 + $0x6] sm:$0x3] }
 0x52b   :  { %v280_v37 = vpop.permute.xlu0 %279 }
 0x52c   :  { %v282_v38 = vmul.f32 %v1252_v23, %v280_v37 }
 0x52d   :  { %v307_v39 = vpop.permute.xlu1 %306 }
 0x52e   :  { %v317_v40 = vrot.slane %v282_v38, %v1450_v16  ;;  %v309_v41 = vmul.f32 %v1254_v25, %v307_v39  ;;  %v477_v39 = vunpack.c.l.bf16 %v1183_v36 }
 0x530   :  { %v330_v42 = vrot.slane %v309_v41, %v1450_v16  ;;  %318 = vrot.lane.b32.xlu0 %v317_v40, %s1360_s27 }
 0x532   :  { %331 = vrot.lane.b32.xlu1 %v330_v42, %s1361_s28 }
 0x5a2   :  { %v319_v43 = vpop.permute.xlu0 %318 }
 0x5a3   :  { %1175 = vst.msk [vmem:[%s1724_s2 + $0x2] sm:$0x3] %vm181_vm0, %v319_v43 }
 0x5a4   :  { %v332_v44 = vpop.permute.xlu1 %331 }
 0x5a5   :  { %1176 = vst.msk [vmem:[%s1724_s2 + $0xc] sm:$0x3] %vm195_vm1, %v332_v44  ;;  %v336_v45 = vsel %vm197_vm2, %v319_v43, %v332_v44 }
 0x5a6   :  { %v340_v46 = vpack.c.bf16 %v336_v45, %v336_v45 }
 0x5a8   :  { %1178 = vmatmul.mubr.msk.bf16.vlgmr.msra.gmra.mrb[4].mxu0 %vm62_vm3, %v340_v46 }
 0x5a9   :  { %621 = vmatpush1.bf16.msra.mxu0 %v1387_v2  ;;  %652 = vmatprep.mubr.bf16.mxu0 %v1357_v1 }
 0x5aa   :  { %622 = vmatprep.subr.bf16.mxu0 %v1393_v3 }
 0x5ad   :  { %623 = vmatpush1.bf16.msra.mxu0 %v1400_v4 }
 0x5ae   :  { %624 = vmatprep.subr.bf16.mxu0 %v1407_v5 }
 0x5b1   :  { %625 = vmatpush1.bf16.msra.mxu0 %v1414_v6 }
 0x5b2   :  { %626 = vmatprep.subr.bf16.mxu0 %v1421_v7 }
 0x5b5   :  { %627 = vmatpush1.bf16.msra.mxu0 %v1428_v8 }
 0x5b6   :  { %892 = vmatprep.subr.bf16.mxu0 %v1380_v0 }
 0x67b   :  { %v378_v48 = vpop.f32.mrb[4].mxu0 }
 0x67c   :  { %v380_v49 = vpop.f32.mrb[5].mxu0 }
 0x67d   :  { %v387_v51 = vcombine.low %v378_v48, %v380_v49  ;;  %v382_v52 = vpop.f32.mrb[6].mxu0 }
 0x67e   :  { %v383_v53 = vpop.f32.mrb[7].mxu0 }
 0x67f   :  { %v394_v54 = vrot.slane %v387_v51, %v1450_v16 }
 0x681   :  { %v396_v55 = vadd.f32 %v394_v54, %v339_v50 }
 0x683   :  { %1261 = vtanh.f32 %v396_v55  ;;  %430 = vrot.lane.b32.xlu0 %v396_v55, %s1359_s26  ;;  %v422_v57 = vrot.slane %v396_v55, 2  ;;  %v1179_v58 = vmul.f32 -1.442695, %v396_v55 }
 0x685   :  { %v1180_v59 = vmul.f32 -1.442695, %v422_v57  ;;  %1263 = vpow2.f32 %v1179_v58 }
 0x687   :  { %1265 = vpow2.f32 %v1180_v59 }
 0x68d   :  { %v1262_v56 = vpop.eup %1261 }
 0x68e   :  { %406 = vrot.lane.b32.xlu1 %v1262_v56, %s1359_s26 }
 0x68f   :  { %v1264_v60 = vpop.eup %1263 }
 0x690   :  { %v400_v62 = vadd.f32 1.0, %v1264_v60 }
 0x691   :  { %v1266_v61 = vpop.eup %1265 }
 0x692   :  { %v427_v63 = vadd.f32 1.0, %v1266_v61  ;;  %1267 = vrcp.f32 %v400_v62 }
 0x694   :  { %1269 = vrcp.f32 %v427_v63 }
 0x69c   :  { %v1268_v11 = vpop.eup %1267 }
 0x69d   :  { %v404_v18 = vmul.f32 %v1268_v11, %v1497_v31 }
 0x69e   :  { %v1270_v13 = vpop.eup %1269 }
 0x69f   :  { %v435_v21 = vmul.f32 %v1270_v13, %v1501_v34 }
 0x6f5   :  { %v431_v9 = vpop.permute.xlu0 %430 }
 0x6f6   :  { %v432_v10 = vrot.slane %v431_v9, 2 }
 0x6f8   :  { %1271 = vtanh.f32 %v432_v10 }
 0x700   :  { %v407_v12 = vpop.permute.xlu1 %406 }
 0x701   :  { %v409_v14 = vmul.f32 %v1268_v11, %v407_v12 }
 0x702   :  { %v1272_v15 = vpop.eup %1271 }
 0x703   :  { %411 = vrot.lane.b32.xlu0 %v409_v14, %s1359_s26  ;;  %v436_v17 = vmul.f32 %v1272_v15, %v1270_v13 }
 0x705   :  { %438 = vrot.lane.b32.xlu1 %v436_v17, %s1359_s26 }
 0x775   :  { %v412_v19 = vpop.permute.xlu0 %411 }
 0x776   :  { %v1538_v20 = vadd.f32 %v412_v19, %v404_v18 }
 0x777   :  { %v439_v22 = vpop.permute.xlu1 %438 }
 0x778   :  { %1273 = vtanh.f32 %v1538_v20  ;;  %v1542_v23 = vadd.f32 %v439_v22, %v435_v21 }
 0x77a   :  { %1275 = vtanh.f32 %v1542_v23 }
 0x782   :  { %v1274_v24 = vpop.eup %1273 }
 0x783   :  { %417 = vrot.lane.b32.xlu0 %v1274_v24, %s1359_s26  ;;  %v1189_v24 = vld [vmem:[%s1723_s0 + $0x8] sm:$0x3] }
 0x784   :  { %v1276_v25 = vpop.eup %1275 }
 0x785   :  { %444 = vrot.lane.b32.xlu1 %v1276_v25, %s1359_s26 }
 0x7f5   :  { %v418_v26 = vpop.permute.xlu0 %417 }
 0x7f6   :  { %v420_v27 = vmul.f32 %v1268_v11, %v418_v26 }
 0x7f7   :  { %v445_v28 = vpop.permute.xlu1 %444 }
 0x7f8   :  { %v455_v29 = vrot.slane %v420_v27, %v1450_v16  ;;  %v447_v30 = vmul.f32 %v1270_v13, %v445_v28  ;;  %v615_v27 = vunpack.c.l.bf16 %v1189_v24 }
 0x7fa   :  { %v468_v31 = vrot.slane %v447_v30, %v1450_v16  ;;  %456 = vrot.lane.b32.xlu0 %v455_v29, %s1360_s27 }
 0x7fc   :  { %469 = vrot.lane.b32.xlu1 %v468_v31, %s1361_s28 }
 0x86c   :  { %v457_v32 = vpop.permute.xlu0 %456 }
 0x86d   :  { %1181 = vst.msk [vmem:[%s1724_s2 + $0x4] sm:$0x3] %vm181_vm0, %v457_v32 }
 0x86e   :  { %v470_v33 = vpop.permute.xlu1 %469 }
 0x86f   :  { %1182 = vst.msk [vmem:[%s1724_s2 + $0xa] sm:$0x3] %vm195_vm1, %v470_v33  ;;  %v474_v34 = vsel %vm197_vm2, %v457_v32, %v470_v33 }
 0x870   :  { %v478_v35 = vpack.c.bf16 %v474_v34, %v474_v34 }
 0x872   :  { %1184 = vmatmul.mubr.msk.bf16.vlgmr.msra.gmra.mrb[4].mxu1 %vm62_vm3, %v478_v35 }
 0x873   :  { %757 = vmatpush1.bf16.msra.mxu1 %v1387_v2  ;;  %788 = vmatprep.mubr.bf16.mxu1 %v1357_v1 }
 0x874   :  { %758 = vmatprep.subr.bf16.mxu1 %v1393_v3 }
 0x877   :  { %759 = vmatpush1.bf16.msra.mxu1 %v1400_v4 }
 0x878   :  { %760 = vmatprep.subr.bf16.mxu1 %v1407_v5 }
 0x87b   :  { %761 = vmatpush1.bf16.msra.mxu1 %v1414_v6 }
 0x87c   :  { %762 = vmatprep.subr.bf16.mxu1 %v1421_v7 }
 0x87f   :  { %763 = vmatpush1.bf16.msra.mxu1 %v1428_v8 }
 0x880   :  { %1028 = vmatprep.subr.bf16.mxu1 %v1380_v0 }
 0x945   :  { %v516_v37 = vpop.f32.mrb[4].mxu1 }
 0x946   :  { %v518_v38 = vpop.f32.mrb[5].mxu1 }
 0x947   :  { %v525_v40 = vcombine.low %v516_v37, %v518_v38  ;;  %v520_v41 = vpop.f32.mrb[6].mxu1 }
 0x948   :  { %v521_v42 = vpop.f32.mrb[7].mxu1 }
 0x949   :  { %v532_v43 = vrot.slane %v525_v40, %v1450_v16 }
 0x94b   :  { %v534_v44 = vadd.f32 %v532_v43, %v477_v39 }
 0x94d   :  { %1277 = vtanh.f32 %v534_v44  ;;  %568 = vrot.lane.b32.xlu0 %v534_v44, %s1359_s26  ;;  %v560_v0 = vrot.slane %v534_v44, 2  ;;  %v1185_v46 = vmul.f32 -1.442695, %v534_v44 }
 0x94f   :  { %v1186_v47 = vmul.f32 -1.442695, %v560_v0  ;;  %1279 = vpow2.f32 %v1185_v46 }
 0x951   :  { %1281 = vpow2.f32 %v1186_v47 }
 0x957   :  { %v1278_v45 = vpop.eup %1277 }
 0x958   :  { %544 = vrot.lane.b32.xlu1 %v1278_v45, %s1359_s26 }
 0x959   :  { %v1280_v48 = vpop.eup %1279 }
 0x95a   :  { %v538_v50 = vadd.f32 1.0, %v1280_v48 }
 0x95b   :  { %v1282_v49 = vpop.eup %1281 }
 0x95c   :  { %v565_v51 = vadd.f32 1.0, %v1282_v49  ;;  %1283 = vrcp.f32 %v538_v50 }
 0x95e   :  { %1285 = vrcp.f32 %v565_v51 }
 0x966   :  { %v1284_v54 = vpop.eup %1283 }
 0x967   :  { %v542_v60 = vmul.f32 %v1284_v54, %v1538_v20 }
 0x968   :  { %v1286_v56 = vpop.eup %1285 }
 0x969   :  { %v573_v63 = vmul.f32 %v1286_v56, %v1542_v23 }
 0x9bf   :  { %v569_v52 = vpop.permute.xlu0 %568 }
 0x9c0   :  { %v570_v53 = vrot.slane %v569_v52, 2 }
 0x9c2   :  { %1287 = vtanh.f32 %v570_v53 }
 0x9ca   :  { %v545_v55 = vpop.permute.xlu1 %544 }
 0x9cb   :  { %v547_v57 = vmul.f32 %v1284_v54, %v545_v55 }
 0x9cc   :  { %v1288_v58 = vpop.eup %1287 }
 0x9cd   :  { %549 = vrot.lane.b32.xlu0 %v547_v57, %s1359_s26  ;;  %v574_v59 = vmul.f32 %v1288_v58, %v1286_v56 }
 0x9cf   :  { %576 = vrot.lane.b32.xlu1 %v574_v59, %s1359_s26 }
 0xa3f   :  { %v550_v61 = vpop.permute.xlu0 %549 }
 0xa40   :  { %v1579_v62 = vadd.f32 %v550_v61, %v542_v60 }
 0xa41   :  { %v577_v9 = vpop.permute.xlu1 %576 }
 0xa42   :  { %1289 = vtanh.f32 %v1579_v62  ;;  %v1583_v10 = vadd.f32 %v577_v9, %v573_v63 }
 0xa44   :  { %1291 = vtanh.f32 %v1583_v10 }
 0xa4c   :  { %v1290_v11 = vpop.eup %1289 }
 0xa4d   :  { %555 = vrot.lane.b32.xlu0 %v1290_v11, %s1359_s26  ;;  %v1195_v11 = vld [vmem:[%s1723_s0 + $0xa] sm:$0x3] }
 0xa4e   :  { %v1292_v12 = vpop.eup %1291 }
 0xa4f   :  { %582 = vrot.lane.b32.xlu1 %v1292_v12, %s1359_s26 }
 0xabf   :  { %v556_v13 = vpop.permute.xlu0 %555 }
 0xac0   :  { %v558_v14 = vmul.f32 %v1284_v54, %v556_v13  ;;  %v751_v13 = vunpack.c.l.bf16 %v1195_v11 }
 0xac1   :  { %v583_v15 = vpop.permute.xlu1 %582 }
 0xac2   :  { %v593_v17 = vrot.slane %v558_v14, %v1450_v16  ;;  %v585_v18 = vmul.f32 %v1286_v56, %v583_v15 }
 0xac4   :  { %v606_v19 = vrot.slane %v585_v18, %v1450_v16  ;;  %594 = vrot.lane.b32.xlu0 %v593_v17, %s1360_s27 }
 0xac6   :  { %607 = vrot.lane.b32.xlu1 %v606_v19, %s1361_s28 }
 0xb36   :  { %v595_v20 = vpop.permute.xlu0 %594 }
 0xb37   :  { %1187 = vst.msk [vmem:[%s1724_s2 + $0x6] sm:$0x3] %vm181_vm0, %v595_v20 }
 0xb38   :  { %v608_v21 = vpop.permute.xlu1 %607 }
 0xb39   :  { %1188 = vst.msk [vmem:[%s1724_s2 + $0x8] sm:$0x3] %vm195_vm1, %v608_v21  ;;  %v612_v22 = vsel %vm197_vm2, %v595_v20, %v608_v21 }
 0xb3a   :  { %v616_v23 = vpack.c.bf16 %v612_v22, %v612_v22 }
 0xb3c   :  { %1190 = vmatmul.mubr.msk.bf16.vlgmr.msra.gmra.mrb[8].mxu0 %vm62_vm3, %v616_v23 }
 0xb3d   :  { %893 = vmatpush1.bf16.msra.mxu0 %v1387_v2  ;;  %924 = vmatprep.mubr.bf16.mxu0 %v1357_v1 }
 0xb3e   :  { %894 = vmatprep.subr.bf16.mxu0 %v1393_v3 }
 0xb41   :  { %895 = vmatpush1.bf16.msra.mxu0 %v1400_v4 }
 0xb42   :  { %896 = vmatprep.subr.bf16.mxu0 %v1407_v5 }
 0xb45   :  { %897 = vmatpush1.bf16.msra.mxu0 %v1414_v6 }
 0xb46   :  { %898 = vmatprep.subr.bf16.mxu0 %v1421_v7 }
 0xb49   :  { %899 = vmatpush1.bf16.msra.mxu0 %v1428_v8 }
 0xc0f   :  { %v654_v25 = vpop.f32.mrb[8].mxu0 }
 0xc10   :  { %v656_v26 = vpop.f32.mrb[9].mxu0 }
 0xc11   :  { %v663_v28 = vcombine.low %v654_v25, %v656_v26  ;;  %v658_v29 = vpop.f32.mrb[10].mxu0 }
 0xc12   :  { %v659_v30 = vpop.f32.mrb[11].mxu0 }
 0xc13   :  { %v670_v31 = vrot.slane %v663_v28, %v1450_v16 }
 0xc15   :  { %v672_v32 = vadd.f32 %v670_v31, %v615_v27 }
 0xc17   :  { %1293 = vtanh.f32 %v672_v32  ;;  %706 = vrot.lane.b32.xlu0 %v672_v32, %s1359_s26  ;;  %v698_v34 = vrot.slane %v672_v32, 2  ;;  %v1191_v35 = vmul.f32 -1.442695, %v672_v32 }
 0xc19   :  { %v1192_v36 = vmul.f32 -1.442695, %v698_v34  ;;  %1295 = vpow2.f32 %v1191_v35 }
 0xc1b   :  { %1297 = vpow2.f32 %v1192_v36 }
 0xc21   :  { %v1294_v33 = vpop.eup %1293 }
 0xc22   :  { %682 = vrot.lane.b32.xlu1 %v1294_v33, %s1359_s26 }
 0xc23   :  { %v1296_v37 = vpop.eup %1295 }
 0xc24   :  { %v676_v39 = vadd.f32 1.0, %v1296_v37 }
 0xc25   :  { %v1298_v38 = vpop.eup %1297 }
 0xc26   :  { %v703_v40 = vadd.f32 1.0, %v1298_v38  ;;  %1299 = vrcp.f32 %v676_v39 }
 0xc28   :  { %1301 = vrcp.f32 %v703_v40 }
 0xc30   :  { %v1300_v43 = vpop.eup %1299 }
 0xc31   :  { %v680_v48 = vmul.f32 %v1300_v43, %v1579_v62 }
 0xc32   :  { %v1302_v45 = vpop.eup %1301 }
 0xc33   :  { %v711_v51 = vmul.f32 %v1302_v45, %v1583_v10 }
 0xc89   :  { %v707_v41 = vpop.permute.xlu0 %706 }
 0xc8a   :  { %v708_v42 = vrot.slane %v707_v41, 2 }
 0xc8c   :  { %1303 = vtanh.f32 %v708_v42 }
 0xc94   :  { %v683_v44 = vpop.permute.xlu1 %682 }
 0xc95   :  { %v685_v0 = vmul.f32 %v1300_v43, %v683_v44 }
 0xc96   :  { %v1304_v46 = vpop.eup %1303 }
 0xc97   :  { %687 = vrot.lane.b32.xlu0 %v685_v0, %s1359_s26  ;;  %v712_v47 = vmul.f32 %v1304_v46, %v1302_v45  ;;  %v1201_v46 = vld [vmem:[%s1723_s0 + $0xc] sm:$0x3] }
 0xc99   :  { %714 = vrot.lane.b32.xlu1 %v712_v47, %s1359_s26 }
 0xd09   :  { %v688_v49 = vpop.permute.xlu0 %687 }
 0xd0a   :  { %v1619_v50 = vadd.f32 %v688_v49, %v680_v48  ;;  %v887_v49 = vunpack.c.l.bf16 %v1201_v46 }
 0xd0b   :  { %v715_v52 = vpop.permute.xlu1 %714 }
 0xd0c   :  { %1305 = vtanh.f32 %v1619_v50  ;;  %v1623_v53 = vadd.f32 %v715_v52, %v711_v51 }
 0xd0e   :  { %1307 = vtanh.f32 %v1623_v53 }
 0xd16   :  { %v1306_v54 = vpop.eup %1305 }
 0xd17   :  { %693 = vrot.lane.b32.xlu0 %v1306_v54, %s1359_s26 }
 0xd18   :  { %v1308_v55 = vpop.eup %1307 }
 0xd19   :  { %720 = vrot.lane.b32.xlu1 %v1308_v55, %s1359_s26 }
 0xd89   :  { %v694_v56 = vpop.permute.xlu0 %693 }
 0xd8a   :  { %v696_v57 = vmul.f32 %v1300_v43, %v694_v56 }
 0xd8b   :  { %v721_v58 = vpop.permute.xlu1 %720 }
 0xd8c   :  { %v731_v59 = vrot.slane %v696_v57, %v1450_v16  ;;  %v723_v60 = vmul.f32 %v1302_v45, %v721_v58 }
 0xd8e   :  { %v743_v61 = vrot.slane %v723_v60, %v1450_v16  ;;  %732 = vrot.lane.b32.xlu0 %v731_v59, %s1360_s27 }
 0xd90   :  { %744 = vrot.lane.b32.xlu1 %v743_v61, %s1361_s28 }
 0xe00   :  { %v733_v62 = vpop.permute.xlu0 %732 }
 0xe01   :  { %1193 = vst.msk [vmem:[%s1724_s2 + $0x8] sm:$0x3] %vm181_vm0, %v733_v62 }
 0xe02   :  { %v745_v63 = vpop.permute.xlu1 %744 }
 0xe03   :  { %1194 = vst.msk [vmem:[%s1724_s2 + $0x6] sm:$0x3] %vm195_vm1, %v745_v63  ;;  %v748_v9 = vsel %vm197_vm2, %v733_v62, %v745_v63 }
 0xe04   :  { %v752_v10 = vpack.c.bf16 %v748_v9, %v748_v9 }
 0xe06   :  { %1196 = vmatmul.mubr.msk.bf16.vlgmr.msra.gmra.mrb[8].mxu1 %vm62_vm3, %v752_v10 }
 0xe07   :  { %1029 = vmatpush1.bf16.msra.mxu1 %v1387_v2  ;;  %1060 = vmatprep.mubr.bf16.mxu1 %v1357_v1 }
 0xe08   :  { %1030 = vmatprep.subr.bf16.mxu1 %v1393_v3 }
 0xe0b   :  { %1031 = vmatpush1.bf16.msra.mxu1 %v1400_v4 }
 0xe0c   :  { %1032 = vmatprep.subr.bf16.mxu1 %v1407_v5 }
 0xe0f   :  { %1033 = vmatpush1.bf16.msra.mxu1 %v1414_v6 }
 0xe10   :  { %1034 = vmatprep.subr.bf16.mxu1 %v1421_v7 }
 0xe13   :  { %1035 = vmatpush1.bf16.msra.mxu1 %v1428_v8 }
 0xed9   :  { %v790_v12 = vpop.f32.mrb[8].mxu1 }
 0xeda   :  { %v792_v2 = vpop.f32.mrb[9].mxu1 }
 0xedb   :  { %v799_v1 = vcombine.low %v790_v12, %v792_v2  ;;  %v794_v14 = vpop.f32.mrb[10].mxu1 }
 0xedc   :  { %v795_v3 = vpop.f32.mrb[11].mxu1 }
 0xedd   :  { %v806_v4 = vrot.slane %v799_v1, %v1450_v16 }
 0xedf   :  { %v808_v15 = vadd.f32 %v806_v4, %v751_v13 }
 0xee1   :  { %1309 = vtanh.f32 %v808_v15  ;;  %842 = vrot.lane.b32.xlu0 %v808_v15, %s1359_s26  ;;  %v834_v6 = vrot.slane %v808_v15, 2  ;;  %v1197_v7 = vmul.f32 -1.442695, %v808_v15 }
 0xee3   :  { %v1198_v8 = vmul.f32 -1.442695, %v834_v6  ;;  %1311 = vpow2.f32 %v1197_v7 }
 0xee5   :  { %1313 = vpow2.f32 %v1198_v8 }
 0xeeb   :  { %v1310_v5 = vpop.eup %1309 }
 0xeec   :  { %818 = vrot.lane.b32.xlu1 %v1310_v5, %s1359_s26 }
 0xeed   :  { %v1312_v17 = vpop.eup %1311 }
 0xeee   :  { %v812_v19 = vadd.f32 1.0, %v1312_v17 }
 0xeef   :  { %v1314_v18 = vpop.eup %1313 }
 0xef0   :  { %v839_v20 = vadd.f32 1.0, %v1314_v18  ;;  %1315 = vrcp.f32 %v812_v19 }
 0xef2   :  { %1317 = vrcp.f32 %v839_v20 }
 0xefa   :  { %v1316_v23 = vpop.eup %1315 }
 0xefb   :  { %v816_v29 = vmul.f32 %v1316_v23, %v1619_v50 }
 0xefc   :  { %v1318_v25 = vpop.eup %1317 }
 0xefd   :  { %v847_v32 = vmul.f32 %v1318_v25, %v1623_v53 }
 0xf53   :  { %v843_v21 = vpop.permute.xlu0 %842 }
 0xf54   :  { %v844_v22 = vrot.slane %v843_v21, 2 }
 0xf56   :  { %1319 = vtanh.f32 %v844_v22 }
 0xf5e   :  { %v819_v24 = vpop.permute.xlu1 %818 }
 0xf5f   :  { %v821_v26 = vmul.f32 %v1316_v23, %v819_v24 }
 0xf60   :  { %v1320_v27 = vpop.eup %1319 }
 0xf61   :  { %823 = vrot.lane.b32.xlu0 %v821_v26, %s1359_s26  ;;  %v848_v28 = vmul.f32 %v1320_v27, %v1318_v25  ;;  %v1207_v27 = vld [vmem:[%s1723_s0 + $0xe] sm:$0x3] }
 0xf63   :  { %850 = vrot.lane.b32.xlu1 %v848_v28, %s1359_s26 }
 0xfd3   :  { %v824_v30 = vpop.permute.xlu0 %823 }
 0xfd4   :  { %v826_v31 = vadd.f32 %v824_v30, %v816_v29  ;;  %v1023_v30 = vunpack.c.l.bf16 %v1207_v27 }
 0xfd5   :  { %v851_v33 = vpop.permute.xlu1 %850 }
 0xfd6   :  { %1321 = vtanh.f32 %v826_v31  ;;  %v853_v34 = vadd.f32 %v851_v33, %v847_v32 }
 0xfd8   :  { %1323 = vtanh.f32 %v853_v34 }
 0xfe0   :  { %v1322_v35 = vpop.eup %1321 }
 0xfe1   :  { %829 = vrot.lane.b32.xlu0 %v1322_v35, %s1359_s26 }
 0xfe2   :  { %v1324_v36 = vpop.eup %1323 }
 0xfe3   :  { %856 = vrot.lane.b32.xlu1 %v1324_v36, %s1359_s26 }
0x1053   :  { %v830_v37 = vpop.permute.xlu0 %829 }
0x1054   :  { %v832_v38 = vmul.f32 %v1316_v23, %v830_v37 }
0x1055   :  { %v857_v39 = vpop.permute.xlu1 %856 }
0x1056   :  { %v867_v40 = vrot.slane %v832_v38, %v1450_v16  ;;  %v859_v41 = vmul.f32 %v1318_v25, %v857_v39 }
0x1058   :  { %v879_v42 = vrot.slane %v859_v41, %v1450_v16  ;;  %868 = vrot.lane.b32.xlu0 %v867_v40, %s1360_s27 }
0x105a   :  { %880 = vrot.lane.b32.xlu1 %v879_v42, %s1361_s28 }
0x10ca   :  { %v869_v43 = vpop.permute.xlu0 %868 }
0x10cb   :  { %1199 = vst.msk [vmem:[%s1724_s2 + $0xa] sm:$0x3] %vm181_vm0, %v869_v43 }
0x10cc   :  { %v881_v44 = vpop.permute.xlu1 %880 }
0x10cd   :  { %1200 = vst.msk [vmem:[%s1724_s2 + $0x4] sm:$0x3] %vm195_vm1, %v881_v44  ;;  %v884_v45 = vsel %vm197_vm2, %v869_v43, %v881_v44 }
0x10ce   :  { %v888_v0 = vpack.c.bf16 %v884_v45, %v884_v45 }
0x10d0   :  { %1202 = vmatmul.mubr.msk.bf16.vlgmr.msra.gmra.mrb[12].mxu0 %vm62_vm3, %v888_v0 }
0x11a3   :  { %v926_v47 = vpop.f32.mrb[12].mxu0 }
0x11a4   :  { %v928_v48 = vpop.f32.mrb[13].mxu0 }
0x11a5   :  { %v935_v50 = vcombine.low %v926_v47, %v928_v48  ;;  %v930_v51 = vpop.f32.mrb[14].mxu0 }
0x11a6   :  { %v931_v52 = vpop.f32.mrb[15].mxu0 }
0x11a7   :  { %v942_v53 = vrot.slane %v935_v50, %v1450_v16 }
0x11a9   :  { %v944_v54 = vadd.f32 %v942_v53, %v887_v49 }
0x11ab   :  { %1325 = vtanh.f32 %v944_v54  ;;  %978 = vrot.lane.b32.xlu0 %v944_v54, %s1359_s26  ;;  %v970_v56 = vrot.slane %v944_v54, 2  ;;  %v1203_v57 = vmul.f32 -1.442695, %v944_v54 }
0x11ad   :  { %v1204_v58 = vmul.f32 -1.442695, %v970_v56  ;;  %1327 = vpow2.f32 %v1203_v57 }
0x11af   :  { %1329 = vpow2.f32 %v1204_v58 }
0x11b5   :  { %v1326_v55 = vpop.eup %1325 }
0x11b6   :  { %954 = vrot.lane.b32.xlu1 %v1326_v55, %s1359_s26 }
0x11b7   :  { %v1328_v59 = vpop.eup %1327 }
0x11b8   :  { %v948_v61 = vadd.f32 1.0, %v1328_v59 }
0x11b9   :  { %v1330_v60 = vpop.eup %1329 }
0x11ba   :  { %v975_v62 = vadd.f32 1.0, %v1330_v60  ;;  %1331 = vrcp.f32 %v948_v61 }
0x11bc   :  { %1333 = vrcp.f32 %v975_v62 }
0x11c4   :  { %v1332_v10 = vpop.eup %1331 }
0x11c5   :  { %v952_v14 = vmul.f32 %v1332_v10, %v826_v31 }
0x11c6   :  { %v1334_v12 = vpop.eup %1333 }
0x11c7   :  { %v983_v15 = vmul.f32 %v1334_v12, %v853_v34 }
0x121d   :  { %v979_v63 = vpop.permute.xlu0 %978 }
0x121e   :  { %v980_v9 = vrot.slane %v979_v63, 2 }
0x1220   :  { %1335 = vtanh.f32 %v980_v9 }
0x1228   :  { %v955_v11 = vpop.permute.xlu1 %954 }
0x1229   :  { %v957_v2 = vmul.f32 %v1332_v10, %v955_v11 }
0x122a   :  { %v1336_v13 = vpop.eup %1335 }
0x122b   :  { %959 = vrot.lane.b32.xlu0 %v957_v2, %s1359_s26  ;;  %v984_v1 = vmul.f32 %v1336_v13, %v1334_v12 }
0x122d   :  { %986 = vrot.lane.b32.xlu1 %v984_v1, %s1359_s26 }
0x129d   :  { %v960_v3 = vpop.permute.xlu0 %959 }
0x129e   :  { %v962_v4 = vadd.f32 %v960_v3, %v952_v14 }
0x129f   :  { %v987_v5 = vpop.permute.xlu1 %986 }
0x12a0   :  { %1337 = vtanh.f32 %v962_v4  ;;  %v989_v6 = vadd.f32 %v987_v5, %v983_v15 }
0x12a2   :  { %1339 = vtanh.f32 %v989_v6 }
0x12aa   :  { %v1338_v7 = vpop.eup %1337 }
0x12ab   :  { %965 = vrot.lane.b32.xlu0 %v1338_v7, %s1359_s26 }
0x12ac   :  { %v1340_v8 = vpop.eup %1339 }
0x12ad   :  { %992 = vrot.lane.b32.xlu1 %v1340_v8, %s1359_s26 }
0x131d   :  { %v966_v17 = vpop.permute.xlu0 %965 }
0x131e   :  { %v968_v18 = vmul.f32 %v1332_v10, %v966_v17 }
0x131f   :  { %v993_v19 = vpop.permute.xlu1 %992 }
0x1320   :  { %v1003_v20 = vrot.slane %v968_v18, %v1450_v16  ;;  %v995_v21 = vmul.f32 %v1334_v12, %v993_v19 }
0x1322   :  { %v1015_v22 = vrot.slane %v995_v21, %v1450_v16  ;;  %1004 = vrot.lane.b32.xlu0 %v1003_v20, %s1360_s27 }
0x1324   :  { %1016 = vrot.lane.b32.xlu1 %v1015_v22, %s1361_s28 }
0x1394   :  { %v1005_v23 = vpop.permute.xlu0 %1004 }
0x1395   :  { %1205 = vst.msk [vmem:[%s1724_s2 + $0xc] sm:$0x3] %vm181_vm0, %v1005_v23 }
0x1396   :  { %v1017_v24 = vpop.permute.xlu1 %1016 }
0x1397   :  { %1206 = vst.msk [vmem:[%s1724_s2 + $0x2] sm:$0x3] %vm195_vm1, %v1017_v24  ;;  %v1020_v25 = vsel %vm197_vm2, %v1005_v23, %v1017_v24 }
0x1398   :  { %v1024_v26 = vpack.c.bf16 %v1020_v25, %v1020_v25 }
0x139a   :  { %1208 = vmatmul.mubr.msk.bf16.vlgmr.msra.gmra.mrb[12].mxu1 %vm62_vm3, %v1024_v26 }
0x146d   :  { %v1062_v28 = vpop.f32.mrb[12].mxu1 }
0x146e   :  { %v1064_v29 = vpop.f32.mrb[13].mxu1 }
0x146f   :  { %v1071_v31 = vcombine.low %v1062_v28, %v1064_v29  ;;  %v1066_v32 = vpop.f32.mrb[14].mxu1 }
0x1470   :  { %v1067_v33 = vpop.f32.mrb[15].mxu1 }
0x1471   :  { %v1078_v34 = vrot.slane %v1071_v31, %v1450_v16 }
0x1473   :  { %v1080_v35 = vadd.f32 %v1078_v34, %v1023_v30 }
0x1475   :  { %1341 = vtanh.f32 %v1080_v35  ;;  %1114 = vrot.lane.b32.xlu0 %v1080_v35, %s1359_s26  ;;  %v1106_v37 = vrot.slane %v1080_v35, 2  ;;  %v1209_v38 = vmul.f32 -1.442695, %v1080_v35 }
0x1477   :  { %v1210_v39 = vmul.f32 -1.442695, %v1106_v37  ;;  %1343 = vpow2.f32 %v1209_v38 }
0x1479   :  { %1345 = vpow2.f32 %v1210_v39 }
0x147f   :  { %v1342_v36 = vpop.eup %1341 }
0x1480   :  { %1090 = vrot.lane.b32.xlu1 %v1342_v36, %s1359_s26 }
0x1481   :  { %v1344_v40 = vpop.eup %1343 }
0x1482   :  { %v1084_v42 = vadd.f32 1.0, %v1344_v40 }
0x1483   :  { %v1346_v41 = vpop.eup %1345 }
0x1484   :  { %v1111_v43 = vadd.f32 1.0, %v1346_v41  ;;  %1347 = vrcp.f32 %v1084_v42 }
0x1486   :  { %1349 = vrcp.f32 %v1111_v43 }
0x148e   :  { %v1348_v0 = vpop.eup %1347 }
0x148f   :  { %v1088_v51 = vmul.f32 %v1348_v0, %v962_v4 }
0x1490   :  { %v1350_v47 = vpop.eup %1349 }
0x1491   :  { %v1119_v54 = vmul.f32 %v1350_v47, %v989_v6 }
0x14e7   :  { %v1115_v44 = vpop.permute.xlu0 %1114 }
0x14e8   :  { %v1116_v45 = vrot.slane %v1115_v44, 2 }
0x14ea   :  { %1351 = vtanh.f32 %v1116_v45 }
0x14f2   :  { %v1091_v46 = vpop.permute.xlu1 %1090 }
0x14f3   :  { %v1093_v48 = vmul.f32 %v1348_v0, %v1091_v46 }
0x14f4   :  { %v1352_v49 = vpop.eup %1351 }
0x14f5   :  { %1095 = vrot.lane.b32.xlu0 %v1093_v48, %s1359_s26  ;;  %v1120_v50 = vmul.f32 %v1352_v49, %v1350_v47 }
0x14f7   :  { %1122 = vrot.lane.b32.xlu1 %v1120_v50, %s1359_s26 }
0x1567   :  { %v1096_v52 = vpop.permute.xlu0 %1095 }
0x1568   :  { %v1098_v53 = vadd.f32 %v1096_v52, %v1088_v51 }
0x1569   :  { %v1123_v55 = vpop.permute.xlu1 %1122 }
0x156a   :  { %1353 = vtanh.f32 %v1098_v53  ;;  %v1125_v56 = vadd.f32 %v1123_v55, %v1119_v54 }
0x156c   :  { %1355 = vtanh.f32 %v1125_v56 }
0x1574   :  { %v1354_v57 = vpop.eup %1353 }
0x1575   :  { %1101 = vrot.lane.b32.xlu0 %v1354_v57, %s1359_s26 }
0x1576   :  { %v1356_v58 = vpop.eup %1355 }
0x1577   :  { %1128 = vrot.lane.b32.xlu1 %v1356_v58, %s1359_s26 }
0x15e7   :  { %v1102_v59 = vpop.permute.xlu0 %1101 }
0x15e8   :  { %v1104_v60 = vmul.f32 %v1348_v0, %v1102_v59 }
0x15e9   :  { %v1129_v61 = vpop.permute.xlu1 %1128 }
0x15ea   :  { %v1139_v62 = vrot.slane %v1104_v60, %v1450_v16  ;;  %v1131_v63 = vmul.f32 %v1350_v47, %v1129_v61 }
0x15ec   :  { %v1151_v9 = vrot.slane %v1131_v63, %v1450_v16  ;;  %1140 = vrot.lane.b32.xlu0 %v1139_v62, %s1360_s27 }
0x15ee   :  { %1152 = vrot.lane.b32.xlu1 %v1151_v9, %s1361_s28 }
0x165e   :  { %v1141_v10 = vpop.permute.xlu0 %1140 }
0x165f   :  { %1211 = vst.msk [vmem:[%s1724_s2 + $0xe] sm:$0x3] %vm181_vm0, %v1141_v10 }
0x1660   :  { %v1153_v11 = vpop.permute.xlu1 %1152 }
0x1661   :  { %1155 = vst.msk [vmem:[%s1724_s2] sm:$0x3] %vm195_vm1, %v1153_v11 }

</bundles_post_ra>
